<compile_context>
chip_gen: v7x
topology: tpu7x:2x2x1
jax: 0.10.0
libtpu: 0.0.40
codegen_flags: <defaults>
</compile_context>

<pallas_src>
import jax
import jax.numpy as jnp
from jax import lax
from jax.experimental import pallas as pl
from jax.experimental.pallas import tpu as pltpu

EPS = 1e-5        # nn.BatchNorm2d default eps
LANE = 128        # lane width / channel padding granularity
VMEM_LIMIT = 32 * 1024 * 1024


def _round_up(x, m):
    return (x + m - 1) // m * m


def _largest_divisor_leq(n, target):
    t = min(n, max(1, target))
    for d in range(t, 0, -1):
        if n % d == 0:
            return d
    return n


# --------------------------------------------------------------------------
# Pass 1: 3x3 conv (im2col -> single MXU matmul) + per-tile BN sum / sumsq.
# --------------------------------------------------------------------------
def _conv3x3_stats_kernel(x_hbm, w_ref, yraw_ref, sums_ref, xbuf, sem):
    n = pl.program_id(0)          # batch sample
    h = pl.program_id(1)          # row tile
    h_tiles = pl.num_programs(1)

    _, hw, _, cin_p = xbuf.shape            # (2, Ht+KH-1, W+KW-1, Cin_p)
    _, ht, w, cout_p = yraw_ref.shape       # (1, Ht, W, Cout_p)
    kh_ext = hw - ht + 1                    # KH (= 3)
    kw_ext = xbuf.shape[2] - w + 1          # KW (= 3)
    m = ht * w

    def tile_copy(h_idx, slot):
        start = pl.multiple_of(h_idx * ht, ht)
        return pltpu.make_async_copy(
            x_hbm.at[n, pl.ds(start, hw)],  # (Ht+2, W+2, Cin_p) halo window
            xbuf.at[slot],
            sem.at[slot])

    slot = h % 2

    # Prime the double buffer at the start of each sample's row sweep.
    @pl.when(h == 0)
    def _():
        tile_copy(0, 0).start()

    # Prefetch the next row tile while we compute on the current one.
    @pl.when(h + 1 < h_tiles)
    def _():
        tile_copy(h + 1, 1 - slot).start()

    tile_copy(h, slot).wait()

    xt = xbuf[slot]                          # (Ht+2, W+2, Cin_p)

    # im2col: one (M, KH*KW*Cin_p) patch -> a single matmul with K = 9*Cin_p.
    taps = []
    for kh in range(kh_ext):
        for kw in range(kw_ext):
            taps.append(xt[kh:kh + ht, kw:kw + w, :])
    patch = jnp.concatenate(taps, axis=-1).reshape(m, kh_ext * kw_ext * cin_p)

    acc = jnp.dot(patch, w_ref[...], preferred_element_type=jnp.float32)   # (M, Cout_p) f32

    yraw_ref[...] = acc.reshape(1, ht, w, cout_p)

    # Per-tile channel sum / sum-of-squares for the two-pass BatchNorm,
    # pushed onto the MXU (ones-row matmul) instead of a long sublane reduce.
    ones_row = jnp.ones((1, m), jnp.float32)
    s1 = jnp.dot(ones_row, acc, preferred_element_type=jnp.float32)        # (1, Cout_p)
    s2 = jnp.dot(ones_row, acc * acc, preferred_element_type=jnp.float32)  # (1, Cout_p)
    sums_ref[...] = jnp.concatenate([s1, s2], axis=0).reshape(1, 1, 2, cout_p)


def _conv3x3_bn_stats(x_pad, w_mat, gamma_p, beta_p, *, block_h, count):
    """x_pad: (N, H+2, W+2, Cp) in MXU dtype, w_mat: (9*Cp, Cp) in MXU dtype.
    Returns y_raw (N, H, W, Cp) f32 and folded BN (scale, shift) of shape (1,1,1,Cp)."""
    n, hp, wp, cp = x_pad.shape
    k, cout_p = w_mat.shape
    H, W = hp - 2, wp - 2
    ht = block_h
    assert H % ht == 0
    h_tiles = H // ht

    yraw, sums = pl.pallas_call(
        _conv3x3_stats_kernel,
        out_shape=(jax.ShapeDtypeStruct((n, H, W, cout_p), jnp.float32),
                   jax.ShapeDtypeStruct((n, h_tiles, 2, cout_p), jnp.float32)),
        grid=(n, h_tiles),
        in_specs=[pl.BlockSpec(memory_space=pl.ANY),                 # halo-DMA'd manually
                  pl.BlockSpec((k, cout_p), lambda i, j: (0, 0))],   # weights stay resident
        out_specs=(pl.BlockSpec((1, ht, W, cout_p), lambda i, j: (i, j, 0, 0)),
                   pl.BlockSpec((1, 1, 2, cout_p), lambda i, j: (i, j, 0, 0))),
        scratch_shapes=[pltpu.VMEM((2, ht + 2, W + 2, cp), x_pad.dtype),
                        pltpu.SemaphoreType.DMA((2,))],
        compiler_params=pltpu.CompilerParams(
            dimension_semantics=("parallel", "arbitrary"),
            vmem_limit_bytes=VMEM_LIMIT),
    )(x_pad, w_mat)

    # Tiny per-channel reduction + folded BN affine (plain JAX, negligible).
    s = jnp.sum(sums, axis=(0, 1))                       # (2, Cp)
    mean = s[0] / count
    var = jnp.maximum(s[1] / count - mean * mean, 0.0)   # biased variance (training BN)
    scale = gamma_p * lax.rsqrt(var + EPS)
    shift = beta_p - mean * scale
    return yraw, scale.reshape(1, 1, 1, cout_p), shift.reshape(1, 1, 1, cout_p)


# --------------------------------------------------------------------------
# Pass 2: folded BN affine (+ optional residual) + ReLU, tiled elementwise.
# --------------------------------------------------------------------------
def _bn_act_kernel(y_ref, scale_ref, shift_ref, o_ref):
    y = y_ref[...] * scale_ref[...] + shift_ref[...]
    o_ref[...] = jnp.maximum(y, 0.0).astype(o_ref.dtype)


def _bn_add_act_kernel(y_ref, res_ref, scale_ref, shift_ref, o_ref):
    y = y_ref[...] * scale_ref[...] + shift_ref[...]
    y = y + res_ref[...].astype(jnp.float32)
    o_ref[...] = jnp.maximum(y, 0.0).astype(o_ref.dtype)


def _bn_relu(yraw, scale, shift, *, block_h, out_dtype):
    n, H, W, cp = yraw.shape
    h_tiles = H // block_h
    tile = pl.BlockSpec((1, block_h, W, cp), lambda i, j: (i, j, 0, 0))
    vec = pl.BlockSpec((1, 1, 1, cp), lambda i, j: (0, 0, 0, 0))
    return pl.pallas_call(
        _bn_act_kernel,
        out_shape=jax.ShapeDtypeStruct((n, H, W, cp), out_dtype),
        grid=(n, h_tiles),
        in_specs=[tile, vec, vec],
        out_specs=tile,
        compiler_params=pltpu.CompilerParams(
            dimension_semantics=("parallel", "parallel"),
            vmem_limit_bytes=VMEM_LIMIT),
    )(yraw, scale, shift)


def _bn_add_relu(yraw, res, scale, shift, *, block_h):
    n, H, W, cp = yraw.shape
    h_tiles = H // block_h
    tile = pl.BlockSpec((1, block_h, W, cp), lambda i, j: (i, j, 0, 0))
    vec = pl.BlockSpec((1, 1, 1, cp), lambda i, j: (0, 0, 0, 0))
    return pl.pallas_call(
        _bn_add_act_kernel,
        out_shape=jax.ShapeDtypeStruct((n, H, W, cp), jnp.float32),
        grid=(n, h_tiles),
        in_specs=[tile, tile, vec, vec],
        out_specs=tile,
        compiler_params=pltpu.CompilerParams(
            dimension_semantics=("parallel", "parallel"),
            vmem_limit_bytes=VMEM_LIMIT),
    )(yraw, res, scale, shift)


# --------------------------------------------------------------------------
# Full ResidualBlock forward (bottleneck=False path).
# --------------------------------------------------------------------------
def residual_block_pallas(x_nchw, w1, b1, g1, bt1, w2, b2, g2, bt2,
                          *, mxu_dtype=jnp.bfloat16, block_h=None):
    # Conv bias cancels exactly under training-mode (batch-stat) BatchNorm, so
    # it is dropped from the compute (mathematically a no-op).
    del b1, b2

    n, c, H, W = x_nchw.shape
    cp = _round_up(c, LANE)                 # lane-dense channel padding
    if block_h is None:
        block_h = _largest_divisor_leq(H, max(8, 2048 // max(W, 1)))
    assert H % block_h == 0

    # NCHW -> NHWC once for the whole block; zero-pad channels to Cp.
    x_nhwc = jnp.transpose(x_nchw, (0, 2, 3, 1))
    x_nhwc_p = jnp.pad(x_nhwc, ((0, 0), (0, 0), (0, 0), (0, cp - c)))   # f32 identity

    def prep_w(w):
        # OIHW -> HWIO -> zero-pad channels -> (9*Cp, Cp) im2col weight matrix.
        wh = jnp.transpose(w, (2, 3, 1, 0))
        wh = jnp.pad(wh, ((0, 0), (0, 0), (0, cp - c), (0, cp - c)))
        return wh.reshape(-1, cp).astype(mxu_dtype)

    def prep_bn(g, b):
        return (jnp.pad(g.astype(jnp.float32), (0, cp - c)),
                jnp.pad(b.astype(jnp.float32), (0, cp - c)))

    w1m, w2m = prep_w(w1), prep_w(w2)
    g1p, bt1p = prep_bn(g1, bt1)
    g2p, bt2p = prep_bn(g2, bt2)
    count = float(n * H * W)

    # conv1 + BN1 statistics
    x_in1 = jnp.pad(x_nhwc_p, ((0, 0), (1, 1), (1, 1), (0, 0))).astype(mxu_dtype)
    y1, sc1, sh1 = _conv3x3_bn_stats(x_in1, w1m, g1p, bt1p,
                                     block_h=block_h, count=count)
    # BN1 + ReLU -> mid activation (MXU dtype for the next conv)
    a1 = _bn_relu(y1, sc1, sh1, block_h=block_h, out_dtype=mxu_dtype)

    # conv2 + BN2 statistics
    a1_pad = jnp.pad(a1, ((0, 0), (1, 1), (1, 1), (0, 0)))
    y2, sc2, sh2 = _conv3x3_bn_stats(a1_pad, w2m, g2p, bt2p,
                                     block_h=block_h, count=count)

    # BN2 + residual add + final ReLU
    out_nhwc = _bn_add_relu(y2, x_nhwc_p, sc2, sh2, block_h=block_h)

    return jnp.transpose(out_nhwc[..., :c], (0, 3, 1, 2))      # back to NCHW


# --------------------------------------------------------------------------
# Pure-JAX reference mirroring PyTorch ResidualBlock (train mode) semantics.
# --------------------------------------------------------------------------
def residual_block_reference(x, w1, b1, g1, bt1, w2, b2, g2, bt2, eps=EPS):
    def conv_bn(inp, w, b, g, beta, relu):
        y = lax.conv_general_dilated(inp, w, window_strides=(1, 1),
                                     padding=((1, 1), (1, 1)),
                                     dimension_numbers=("NCHW", "OIHW", "NCHW"))
        y = y + b[None, :, None, None]
        m = jnp.mean(y, axis=(0, 2, 3), keepdims=True)
        v = jnp.mean((y - m) ** 2, axis=(0, 2, 3), keepdims=True)
        y = (y - m) * lax.rsqrt(v + eps)
        y = y * g[None, :, None, None] + beta[None, :, None, None]
        return jnp.maximum(y, 0.0) if relu else y

    out = conv_bn(x, w1, b1, g1, bt1, True)
    out = conv_bn(out, w2, b2, g2, bt2, False)
    return jnp.maximum(out + x, 0.0)


if __name__ == "__main__":
    key = jax.random.PRNGKey(0)
    k_x, k_w1, k_b1, k_w2, k_b2 = jax.random.split(key, 5)

    # Small shapes consistent with ResidualBlock(channels=4).
    N, C, H, W = 2, 4, 16, 16
    KH = KW = 3

    x = jax.random.normal(k_x, (N, C, H, W), dtype=jnp.float32)

    # PyTorch-like uniform(-k, k) init with k = 1/sqrt(fan_in); BN defaults.
    fan_in = C * KH * KW
    bound = 1.0 / (fan_in ** 0.5)
    w1 = jax.random.uniform(k_w1, (C, C, KH, KW), minval=-bound, maxval=bound,
                            dtype=jnp.float32)
    b1 = jax.random.uniform(k_b1, (C,), minval=-bound, maxval=bound, dtype=jnp.float32)
    w2 = jax.random.uniform(k_w2, (C, C, KH, KW), minval=-bound, maxval=bound,
                            dtype=jnp.float32)
    b2 = jax.random.uniform(k_b2, (C,), minval=-bound, maxval=bound, dtype=jnp.float32)
    g1 = jnp.ones((C,), jnp.float32)
    bt1 = jnp.zeros((C,), jnp.float32)
    g2 = jnp.ones((C,), jnp.float32)
    bt2 = jnp.zeros((C,), jnp.float32)
    params = (w1, b1, g1, bt1, w2, b2, g2, bt2)

    ref = residual_block_reference(x, *params)

    # f32 MXU path: tight check of the kernel structure / BN / residual logic.
    # block_h=8 forces 2 row tiles per sample so the halo double-buffer path
    # is actually exercised.
    out_f32 = jax.block_until_ready(
        residual_block_pallas(x, *params, mxu_dtype=jnp.float32, block_h=8))
    assert out_f32.shape == (N, C, H, W), out_f32.shape
    assert jnp.allclose(out_f32, ref, atol=1e-3, rtol=1e-3), \
        float(jnp.max(jnp.abs(out_f32 - ref)))

    # Default bf16-MXU path (perf guidance for v6e/v7x): looser tolerance.
    out_bf16 = jax.block_until_ready(
        residual_block_pallas(x, *params, block_h=8))
    assert out_bf16.shape == (N, C, H, W), out_bf16.shape
    assert jnp.allclose(out_bf16, ref, atol=1e-1, rtol=1e-1), \
        float(jnp.max(jnp.abs(out_bf16 - ref)))

    print("KERNEL_OK")
</pallas_src>

<mosaic_0001>
module attributes {stable_mosaic.version = 11 : i64} {
  func.func @_conv3x3_stats_kernel(%arg0: i32, %arg1: i32, %arg2: memref<2x18x18x128xf32, #tpu.memory_space<any>>, %arg3: memref<1152x128xf32, #tpu.memory_space<vmem>>, %arg4: memref<1x8x16x128xf32, #tpu.memory_space<vmem>>, %arg5: memref<1x1x2x128xf32, #tpu.memory_space<vmem>>, %arg6: memref<2x10x18x128xf32, #tpu.memory_space<vmem>>, %arg7: memref<2x!tpu.dma_semaphore, #tpu.memory_space<semaphore_mem>>) attributes {dimension_semantics = [#tpu.dimension_semantics<parallel>, #tpu.dimension_semantics<arbitrary>], iteration_bounds = array<i64: 2, 2>, scalar_prefetch = 0 : i64, scratch_operands = 2 : i64, tpu.core_type = #tpu.core_type<tc>, window_params = [{}, {pipeline_mode = #tpu.pipeline_mode<synchronous>, transform_indices = @transform_1, window_bounds = array<i64: 1152, 128>}, {transform_indices = @transform_2, window_bounds = array<i64: 1, 8, 16, 128>}, {transform_indices = @transform_3, window_bounds = array<i64: 1, 1, 2, 128>}]} {
    %c2_i32 = arith.constant 2 : i32
    %c0_i32 = arith.constant 0 : i32
    %0 = arith.cmpi eq, %c2_i32, %c0_i32 : i32
    %c1_i32 = arith.constant 1 : i32
    %1 = arith.select %0, %c1_i32, %c2_i32 : i32
    %2 = arith.remsi %arg1, %1 : i32
    %c0_i32_0 = arith.constant 0 : i32
    %3 = arith.cmpi ne, %2, %c0_i32_0 : i32
    %c0_i32_1 = arith.constant 0 : i32
    %4 = arith.cmpi slt, %2, %c0_i32_1 : i32
    %c0_i32_2 = arith.constant 0 : i32
    %5 = arith.cmpi slt, %1, %c0_i32_2 : i32
    %6 = arith.xori %4, %5 : i1
    %7 = arith.andi %6, %3 : i1
    %8 = arith.addi %2, %1 : i32
    %9 = arith.select %7, %8, %2 : i32
    %c0_i32_3 = arith.constant 0 : i32
    %10 = arith.cmpi eq, %arg1, %c0_i32_3 : i32
    %11 = arith.extui %10 : i1 to i32
    %c0_i32_4 = arith.constant 0 : i32
    %12 = arith.cmpi ne, %11, %c0_i32_4 : i32
    scf.if %12 {
      %c0_i32_28 = arith.constant 0 : i32
      %50 = tpu.assume_multiple %c0_i32_28, 8 : i32
      %c0_i32_29 = arith.constant 0 : i32
      %c0_i32_30 = arith.constant 0 : i32
      %c0_i32_31 = arith.constant 0 : i32
      %c0_i32_32 = arith.constant 0 : i32
      %51 = tpu.memref_slice %arg2[%arg0, %50, %c0_i32_31, %c0_i32_32] : memref<2x18x18x128xf32, #tpu.memory_space<any>> -> memref<1x10x18x128xf32, #tpu.memory_space<any>>
      %52 = tpu.memref_squeeze %51 : memref<1x10x18x128xf32, #tpu.memory_space<any>> -> memref<10x18x128xf32, #tpu.memory_space<any>>
      %c0_i32_33 = arith.constant 0 : i32
      %c0_i32_34 = arith.constant 0 : i32
      %c0_i32_35 = arith.constant 0 : i32
      %53 = tpu.memref_slice %arg6[%c0_i32_29, %c0_i32_33, %c0_i32_34, %c0_i32_35] : memref<2x10x18x128xf32, #tpu.memory_space<vmem>> -> memref<1x10x18x128xf32, #tpu.memory_space<vmem>>
      %54 = tpu.memref_squeeze %53 : memref<1x10x18x128xf32, #tpu.memory_space<vmem>> -> memref<10x18x128xf32, #tpu.memory_space<vmem>>
      %55 = tpu.memref_slice %arg7[%c0_i32_30] : memref<2x!tpu.dma_semaphore, #tpu.memory_space<semaphore_mem>> -> memref<1x!tpu.dma_semaphore, #tpu.memory_space<semaphore_mem>>
      %56 = tpu.memref_squeeze %55 : memref<1x!tpu.dma_semaphore, #tpu.memory_space<semaphore_mem>> -> memref<!tpu.dma_semaphore, #tpu.memory_space<semaphore_mem>>
      tpu.enqueue_dma source(%52 : memref<10x18x128xf32, #tpu.memory_space<any>>) target(%54 : memref<10x18x128xf32, #tpu.memory_space<vmem>>) target_semaphore(%56 : memref<!tpu.dma_semaphore, #tpu.memory_space<semaphore_mem>>)
    } else {
    }
    %c1_i32_5 = arith.constant 1 : i32
    %13 = arith.addi %arg1, %c1_i32_5 : i32
    %c2_i32_6 = arith.constant 2 : i32
    %14 = arith.cmpi slt, %13, %c2_i32_6 : i32
    %15 = arith.extui %14 : i1 to i32
    %c0_i32_7 = arith.constant 0 : i32
    %16 = arith.cmpi ne, %15, %c0_i32_7 : i32
    scf.if %16 {
      %c1_i32_28 = arith.constant 1 : i32
      %50 = arith.addi %arg1, %c1_i32_28 : i32
      %c1_i32_29 = arith.constant 1 : i32
      %51 = arith.subi %c1_i32_29, %9 : i32
      %c8_i32_30 = arith.constant 8 : i32
      %52 = arith.muli %50, %c8_i32_30 : i32
      %53 = tpu.assume_multiple %52, 8 : i32
      %c0_i32_31 = arith.constant 0 : i32
      %c0_i32_32 = arith.constant 0 : i32
      %54 = tpu.memref_slice %arg2[%arg0, %53, %c0_i32_31, %c0_i32_32] : memref<2x18x18x128xf32, #tpu.memory_space<any>> -> memref<1x10x18x128xf32, #tpu.memory_space<any>>
      %55 = tpu.memref_squeeze %54 : memref<1x10x18x128xf32, #tpu.memory_space<any>> -> memref<10x18x128xf32, #tpu.memory_space<any>>
      %c0_i32_33 = arith.constant 0 : i32
      %c0_i32_34 = arith.constant 0 : i32
      %c0_i32_35 = arith.constant 0 : i32
      %56 = tpu.memref_slice %arg6[%51, %c0_i32_33, %c0_i32_34, %c0_i32_35] : memref<2x10x18x128xf32, #tpu.memory_space<vmem>> -> memref<1x10x18x128xf32, #tpu.memory_space<vmem>>
      %57 = tpu.memref_squeeze %56 : memref<1x10x18x128xf32, #tpu.memory_space<vmem>> -> memref<10x18x128xf32, #tpu.memory_space<vmem>>
      %58 = tpu.memref_slice %arg7[%51] : memref<2x!tpu.dma_semaphore, #tpu.memory_space<semaphore_mem>> -> memref<1x!tpu.dma_semaphore, #tpu.memory_space<semaphore_mem>>
      %59 = tpu.memref_squeeze %58 : memref<1x!tpu.dma_semaphore, #tpu.memory_space<semaphore_mem>> -> memref<!tpu.dma_semaphore, #tpu.memory_space<semaphore_mem>>
      tpu.enqueue_dma source(%55 : memref<10x18x128xf32, #tpu.memory_space<any>>) target(%57 : memref<10x18x128xf32, #tpu.memory_space<vmem>>) target_semaphore(%59 : memref<!tpu.dma_semaphore, #tpu.memory_space<semaphore_mem>>)
    } else {
    }
    %c8_i32 = arith.constant 8 : i32
    %17 = arith.muli %arg1, %c8_i32 : i32
    %18 = tpu.assume_multiple %17, 8 : i32
    %c0_i32_8 = arith.constant 0 : i32
    %c0_i32_9 = arith.constant 0 : i32
    %19 = tpu.memref_slice %arg2[%arg0, %18, %c0_i32_8, %c0_i32_9] : memref<2x18x18x128xf32, #tpu.memory_space<any>> -> memref<1x10x18x128xf32, #tpu.memory_space<any>>
    %20 = tpu.memref_squeeze %19 : memref<1x10x18x128xf32, #tpu.memory_space<any>> -> memref<10x18x128xf32, #tpu.memory_space<any>>
    %c0_i32_10 = arith.constant 0 : i32
    %c0_i32_11 = arith.constant 0 : i32
    %c0_i32_12 = arith.constant 0 : i32
    %21 = tpu.memref_slice %arg6[%9, %c0_i32_10, %c0_i32_11, %c0_i32_12] : memref<2x10x18x128xf32, #tpu.memory_space<vmem>> -> memref<1x10x18x128xf32, #tpu.memory_space<vmem>>
    %22 = tpu.memref_squeeze %21 : memref<1x10x18x128xf32, #tpu.memory_space<vmem>> -> memref<10x18x128xf32, #tpu.memory_space<vmem>>
    %23 = tpu.memref_slice %arg7[%9] : memref<2x!tpu.dma_semaphore, #tpu.memory_space<semaphore_mem>> -> memref<1x!tpu.dma_semaphore, #tpu.memory_space<semaphore_mem>>
    %24 = tpu.memref_squeeze %23 : memref<1x!tpu.dma_semaphore, #tpu.memory_space<semaphore_mem>> -> memref<!tpu.dma_semaphore, #tpu.memory_space<semaphore_mem>>
    tpu.wait_dma2 semaphore(%24 : memref<!tpu.dma_semaphore, #tpu.memory_space<semaphore_mem>>) src(%20 : memref<10x18x128xf32, #tpu.memory_space<any>>) dst(%22 : memref<10x18x128xf32, #tpu.memory_space<vmem>>)
    %25 = arith.index_cast %9 : i32 to index
    %c0 = arith.constant 0 : index
    %c0_13 = arith.constant 0 : index
    %c0_14 = arith.constant 0 : index
    %26 = vector.load %arg6[%25, %c0, %c0_13, %c0_14] : memref<2x10x18x128xf32, #tpu.memory_space<vmem>>, vector<1x10x18x128xf32>
    %27 = vector.shape_cast %26 : vector<1x10x18x128xf32> to vector<10x18x128xf32>
    %28 = vector.extract_strided_slice %27 {offsets = [0, 0, 0], sizes = [8, 16, 128], strides = [1, 1, 1]} : vector<10x18x128xf32> to vector<8x16x128xf32>
    %29 = vector.extract_strided_slice %27 {offsets = [0, 1, 0], sizes = [8, 16, 128], strides = [1, 1, 1]} : vector<10x18x128xf32> to vector<8x16x128xf32>
    %30 = vector.extract_strided_slice %27 {offsets = [0, 2, 0], sizes = [8, 16, 128], strides = [1, 1, 1]} : vector<10x18x128xf32> to vector<8x16x128xf32>
    %31 = vector.extract_strided_slice %27 {offsets = [1, 0, 0], sizes = [8, 16, 128], strides = [1, 1, 1]} : vector<10x18x128xf32> to vector<8x16x128xf32>
    %32 = vector.extract_strided_slice %27 {offsets = [1, 1, 0], sizes = [8, 16, 128], strides = [1, 1, 1]} : vector<10x18x128xf32> to vector<8x16x128xf32>
    %33 = vector.extract_strided_slice %27 {offsets = [1, 2, 0], sizes = [8, 16, 128], strides = [1, 1, 1]} : vector<10x18x128xf32> to vector<8x16x128xf32>
    %34 = vector.extract_strided_slice %27 {offsets = [2, 0, 0], sizes = [8, 16, 128], strides = [1, 1, 1]} : vector<10x18x128xf32> to vector<8x16x128xf32>
    %35 = vector.extract_strided_slice %27 {offsets = [2, 1, 0], sizes = [8, 16, 128], strides = [1, 1, 1]} : vector<10x18x128xf32> to vector<8x16x128xf32>
    %36 = vector.extract_strided_slice %27 {offsets = [2, 2, 0], sizes = [8, 16, 128], strides = [1, 1, 1]} : vector<10x18x128xf32> to vector<8x16x128xf32>
    %37 = tpu.concatenate %28, %29, %30, %31, %32, %33, %34, %35, %36 in 2 : vector<8x16x128xf32>, vector<8x16x128xf32>, vector<8x16x128xf32>, vector<8x16x128xf32>, vector<8x16x128xf32>, vector<8x16x128xf32>, vector<8x16x128xf32>, vector<8x16x128xf32>, vector<8x16x128xf32> -> vector<8x16x1152xf32>
    %38 = vector.shape_cast %37 : vector<8x16x1152xf32> to vector<128x1152xf32>
    %c0_15 = arith.constant 0 : index
    %c0_16 = arith.constant 0 : index
    %39 = vector.load %arg3[%c0_15, %c0_16] : memref<1152x128xf32, #tpu.memory_space<vmem>>, vector<1152x128xf32>
    %cst = arith.constant dense<0.000000e+00> : vector<128x128xf32>
    %40 = tpu.matmul %38, %39, %cst {dimension_numbers = #tpu.dot_dimension_numbers<[1], [0], [0], [1], [0, 0, 1, 1], [], []>} : vector<128x1152xf32>, vector<1152x128xf32>, vector<128x128xf32> -> vector<128x128xf32>
    %41 = vector.shape_cast %40 : vector<128x128xf32> to vector<1x8x16x128xf32>
    %c0_17 = arith.constant 0 : index
    %c0_18 = arith.constant 0 : index
    %c0_19 = arith.constant 0 : index
    %c0_20 = arith.constant 0 : index
    %42 = vector.load %arg4[%c0_17, %c0_18, %c0_19, %c0_20] : memref<1x8x16x128xf32, #tpu.memory_space<vmem>>, vector<1x8x16x128xf32>
    tpu.vector_store %arg4[%c0_17, %c0_18, %c0_19, %c0_20], %41 {strides = array<i32>} : memref<1x8x16x128xf32, #tpu.memory_space<vmem>>, vector<1x8x16x128xf32>,
    %cst_21 = arith.constant 1.000000e+00 : f32
    %43 = vector.broadcast %cst_21 : f32 to vector<1x128xf32>
    %cst_22 = arith.constant dense<0.000000e+00> : vector<1x128xf32>
    %44 = tpu.matmul %43, %40, %cst_22 {dimension_numbers = #tpu.dot_dimension_numbers<[1], [0], [0], [1], [0, 0, 1, 1], [], []>} : vector<1x128xf32>, vector<128x128xf32>, vector<1x128xf32> -> vector<1x128xf32>
    %45 = arith.mulf %40, %40 : vector<128x128xf32>
    %cst_23 = arith.constant dense<0.000000e+00> : vector<1x128xf32>
    %46 = tpu.matmul %43, %45, %cst_23 {dimension_numbers = #tpu.dot_dimension_numbers<[1], [0], [0], [1], [0, 0, 1, 1], [], []>} : vector<1x128xf32>, vector<128x128xf32>, vector<1x128xf32> -> vector<1x128xf32>
    %47 = tpu.concatenate %44, %46 in 0 : vector<1x128xf32>, vector<1x128xf32> -> vector<2x128xf32>
    %48 = vector.shape_cast %47 : vector<2x128xf32> to vector<1x1x2x128xf32>
    %c0_24 = arith.constant 0 : index
    %c0_25 = arith.constant 0 : index
    %c0_26 = arith.constant 0 : index
    %c0_27 = arith.constant 0 : index
    %49 = vector.load %arg5[%c0_24, %c0_25, %c0_26, %c0_27] : memref<1x1x2x128xf32, #tpu.memory_space<vmem>>, vector<1x1x2x128xf32>
    tpu.vector_store %arg5[%c0_24, %c0_25, %c0_26, %c0_27], %48 {strides = array<i32>} : memref<1x1x2x128xf32, #tpu.memory_space<vmem>>, vector<1x1x2x128xf32>,
    return
  }
  func.func @transform_1(%arg0: i32, %arg1: i32) -> (i32, i32) {
    %c0_i32 = arith.constant 0 : i32
    %c0_i32_0 = arith.constant 0 : i32
    %c0_i32_1 = arith.constant 0 : i32
    return %c0_i32, %c0_i32_0 : i32, i32
  }
  func.func @transform_2(%arg0: i32, %arg1: i32) -> (i32, i32, i32, i32) {
    %c0_i32 = arith.constant 0 : i32
    %c0_i32_0 = arith.constant 0 : i32
    %c0_i32_1 = arith.constant 0 : i32
    return %arg0, %arg1, %c0_i32, %c0_i32_0 : i32, i32, i32, i32
  }
  func.func @transform_3(%arg0: i32, %arg1: i32) -> (i32, i32, i32, i32) {
    %c0_i32 = arith.constant 0 : i32
    %c0_i32_0 = arith.constant 0 : i32
    %c0_i32_1 = arith.constant 0 : i32
    return %arg0, %arg1, %c0_i32, %c0_i32_0 : i32, i32, i32, i32
  }
}

</mosaic_0001>

<bundles_post_ra>
// kernel: tpu_custom_call.1
= control target key start
LH: loop header
LB: loop body
LE: loop exit
PB: predicated region body
PF: predicated region fallthrough
CT: control target
= control target key end

     0   :  { %s4129_s0 = inlined_call_operand.vmem [shape: f32[2,18,18,128], index: 0, kind: input, shape index: {}]   ;;  %s4130_s1 = inlined_call_operand.vmem [shape: f32[1152,128], index: 1, kind: input, shape index: {}]   ;;  %s4131_s2 = inlined_call_operand.hbm [shape: f32[2,16,16,128], index: 2, kind: output, shape index: {0}]   ;;  %s4132_s3 = inlined_call_operand.hbm [shape: f32[2,2,2,128], index: 3, kind: output, shape index: {1}]  }
   0x1   :  { %4134 = sst [smem:[#allocation14_spill]] %s4129_s0 }
   0x2   :  { %9 = vsyncpa [#allocation5], 0 }
   0x3   :  { %11 = vsyncpa [#allocation5 + $0x1], 0 }
   0x4   :  { %12 = vsyncpa [#allocation7], 0 }
   0x5   :  { %14 = vsyncpa [#allocation7 + $0x1], 0  ;;  %s2933_s12 = smov 0   ;;  %s2935_s13 = smov 0  }
   0x6   :  { %s2937_s14 = smov 0   ;;  %s2939_s15 = smov 0  }
   0x7   :  { %s2941_s16 = smov 0   ;;  %s2943_s17 = smov 0  }
   0x8   :  { %s2945_s18 = smov 0   ;;  %s2947_s19 = smov 0  }
   0x9 LB: > { %s1888_s20 = sadd.s32 4294967295, %s2903_s19   ;;  %s1889_s21 = sadd.s32 4294967294, %s2903_s19   ;;  %s2903_s19 = sphi %s2947_s19, %s20_s19   ;;  %s2899_s18 = sphi %s2945_s18, %s4147_s18   ;;  %s2895_s17 = sphi %s2943_s17, %s4146_s17   ;;  %s2891_s16 = sphi %s2941_s16, %s4145_s16   ;;  %s2887_s15 = sphi %s2939_s15, %s4144_s15   ;;  %s2883_s14 = sphi %s2937_s14, %s4143_s14   ;;  %s2879_s13 = sphi %s2935_s13, %s4142_s13   ;;  %s2875_s12 = sphi %s2933_s12, %s4141_s12  }
   0xa   : > { %s29_s22 = sadd.s32 1, %s2895_s17  ;;  %s32_s23 = sadd.s32 1, %s2899_s18 }
   0xb   : > { %p30_p0 = scmp.ge.s32.totalorder %s29_s22, 2  ;;  %p72_p1 = scmp.ne.s32.totalorder %s2883_s14, %s2879_s13 }
   0xc   : > { %p73_p2 = scmp.eq.s32.totalorder %s1888_s20, 3  ;;  %p78_p5 = scmp.ne.s32.totalorder %s2879_s13, %s2875_s12 }
   0xd   : > { %s4149_s22 = smov (%p30_p0, %s29_s22), 0  ;;  %s4151_s23 = smov (!%p30_p0, %s32_s23), %s2899_s18 }
   0xe   : > { %s58_s24 = ssub.s32 %s2895_s17, %s4149_s22  ;;  %p2984_p3 = por %p73_p2, %p72_p1 }
   0xf   : > { %p34_p4 = scmp.ge.s32.totalorder %s4151_s23, 2  ;;  %p79_p6 = scmp.eq.s32.totalorder %s1889_s21, 3 }
  0x10   : > { %p1891_p7 = scmp.ge.s32.totalorder %s2903_s19, 1  ;;  %p128_p9 = scmp.lt.s32.totalorder %s2903_s19, 5 }
  0x11   : > { %s4153_s23 = smov (%p34_p4, %s4151_s23), 0  ;;  %p2993_p8 = por %p79_p6, %p78_p5 }
  0x12   : > { %4136 = sst [smem:[#allocation13_spill]] %s4153_s23  ;;  %s57_s27 = ssub.s32 %s2899_s18, %s4153_s23 }
  0x13   : > { %s62_s28 = sadd.s32 1, %s2883_s14  ;;  %s59_s29 = sor.u32 %s58_s24, %s57_s27 }
  0x14   : > { %p129_p10 = pnand %p1891_p7, %p128_p9  ;;  %p60_p11 = scmp.eq.s32.totalorder %s59_s29, 0 }
  0x15   : > { %s3005_s4 = sand.u32 (!%p129_p10), 1, %s2879_s13   ;;  %p151_p12 = scmp.lt.s32.totalorder (!%p129_p10), %s2887_s15, 0 }
  0x16   : > { %s3002_s30 = scalar_select %p60_p11, %s2883_s14, %s62_s28  }
  0x17   : > { %132 = sbr.rel (%p129_p10) target bundleno = 732 (0x2dc), region = 24  ;;  %s1892_s5 = sshll.u32 (!%p129_p10), %s3005_s4, 7 }
  0x18   : > { %s1893_s6 = sshll.u32 (!%p129_p10), %s3005_s4, 1  ;;  %s152_s7 = ssub.s32 (!%p129_p10), 0, %s2887_s15 }
  0x19   : > { %s1894_s8 = smin.u32 (!%p129_p10), %s2887_s15, %s152_s7  ;;  %s3014_s20 = scalar_lea.vmem (!%p129_p10), [#allocation4], %s1892_s5 }
  0x1a   : > { %s154_s9 = sand.u32 (!%p129_p10), 1, %s1894_s8   ;;  %s3016_s21 = scalar_lea.vmem (!%p129_p10), [#allocation6], %s1893_s6 }
  0x1b   : > { %s155_s10 = ssub.s32 (!%p129_p10), 0, %s154_s9  ;;  %p1897_p0 = scmp.ne.s32.totalorder (!%p129_p10), %s2887_s15, 0 }
  0x1e   : > { %s4155_s10 = smov (!%p151_p12, %s155_s10), %s154_s9  ;;  %166 = sbr.rel (%p1897_p0) target bundleno = 57 (0x39), region = 28 }
  0x1f   : > { %p1896_p13 = scmp.lt.s32.totalorder %s4155_s10, 0  ;;  %s161_s11 = sadd.s32 2, %s4155_s10 }
  0x20   : > { %s168_s24 = smul.u32 (!%p1897_p0), 432, %s2891_s16  ;;  %s4138_s0 = sld [smem:[#allocation14_spill]] (!%p1897_p0) }
  0x21   : > { %s4157_s11 = smov (!%p1896_p13, %s161_s11), %s4155_s10 }
  0x26   : > { %s3023_s29 = scalar_lea.vmem %s4138_s0, %s168_s24 }
  0x27   : > { %v226_v0 = vld [vmem:[%s3023_s29] sm:$0xff]  ;;  %v228_v1 = vld [vmem:[%s3023_s29 + $0x8] sm:$0xff]  ;;  %v230_v2 = vld [vmem:[%s3023_s29 + $0x18] sm:$0xff] }
  0x28   : > { %227 = vst [vmem:[#allocation2] sm:$0xff] %v226_v0  ;;  %229 = vst [vmem:[#allocation2 + $0x8] sm:$0xff] %v228_v1  ;;  %v232_v3 = vld [vmem:[%s3023_s29 + $0x20] sm:$0xff]  ;;  %v234_v4 = vld [vmem:[%s3023_s29 + $0x30] sm:$0xff] }
  0x29   : > { %231 = vst [vmem:[#allocation2 + $0x18] sm:$0xff] %v230_v2  ;;  %v236_v5 = vld [vmem:[%s3023_s29 + $0x38] sm:$0xff]  ;;  %233 = vst [vmem:[#allocation2 + $0x20] sm:$0xff] %v232_v3  ;;  %v238_v6 = vld [vmem:[%s3023_s29 + $0x48] sm:$0xff] }
  0x2a   : > { %235 = vst [vmem:[#allocation2 + $0x30] sm:$0xff] %v234_v4  ;;  %237 = vst [vmem:[#allocation2 + $0x38] sm:$0xff] %v236_v5  ;;  %v240_v7 = vld [vmem:[%s3023_s29 + $0x50] sm:$0xff]  ;;  %v242_v8 = vld [vmem:[%s3023_s29 + $0x60] sm:$0xff] }
  0x2b   : > { %239 = vst [vmem:[#allocation2 + $0x48] sm:$0xff] %v238_v6  ;;  %241 = vst [vmem:[#allocation2 + $0x50] sm:$0xff] %v240_v7  ;;  %v244_v9 = vld [vmem:[%s3023_s29 + $0x68] sm:$0xff]  ;;  %v246_v10 = vld [vmem:[%s3023_s29 + $0x78] sm:$0xff] }
  0x2c   : > { %243 = vst [vmem:[#allocation2 + $0x60] sm:$0xff] %v242_v8  ;;  %v248_v11 = vld [vmem:[%s3023_s29 + $0x80] sm:$0xff]  ;;  %245 = vst [vmem:[#allocation2 + $0x68] sm:$0xff] %v244_v9  ;;  %v250_v12 = vld [vmem:[%s3023_s29 + $0x90] sm:$0xff] }
  0x2d   : > { %247 = vst [vmem:[#allocation2 + $0x78] sm:$0xff] %v246_v10  ;;  %249 = vst [vmem:[#allocation2 + $0x80] sm:$0xff] %v248_v11  ;;  %v252_v13 = vld [vmem:[%s3023_s29 + $0x98] sm:$0xff]  ;;  %v254_v14 = vld [vmem:[%s3023_s29 + $0xa8] sm:$0xff] }
  0x2e   : > { %251 = vst [vmem:[#allocation2 + $0x90] sm:$0xff] %v250_v12  ;;  %253 = vst [vmem:[#allocation2 + $0x98] sm:$0xff] %v252_v13  ;;  %v256_v15 = vld [vmem:[%s3023_s29 + $0xb0] sm:$0xff]  ;;  %v258_v16 = vld [vmem:[%s3023_s29 + $0xc0] sm:$0xff] }
  0x2f   : > { %255 = vst [vmem:[#allocation2 + $0xa8] sm:$0xff] %v254_v14  ;;  %v260_v17 = vld [vmem:[%s3023_s29 + $0xc8] sm:$0xff]  ;;  %257 = vst [vmem:[#allocation2 + $0xb0] sm:$0xff] %v256_v15  ;;  %v262_v18 = vld [vmem:[%s3023_s29 + $0xd8] sm:$0xff] }
  0x30   : > { %259 = vst [vmem:[#allocation2 + $0xc0] sm:$0xff] %v258_v16  ;;  %261 = vst [vmem:[#allocation2 + $0xc8] sm:$0xff] %v260_v17  ;;  %v264_v19 = vld [vmem:[%s3023_s29 + $0xe0] sm:$0xff]  ;;  %v1898_v20 = vld [vmem:[%s3023_s29 + $0x10] sm:$0x3] }
  0x31   : > { %263 = vst [vmem:[#allocation2 + $0xd8] sm:$0xff] %v262_v18  ;;  %265 = vst [vmem:[#allocation2 + $0xe0] sm:$0xff] %v264_v19  ;;  %v1899_v21 = vld [vmem:[%s3023_s29 + $0x28] sm:$0x3]  ;;  %v1900_v22 = vld [vmem:[%s3023_s29 + $0x40] sm:$0x3] }
  0x32   : > { %276 = vst [vmem:[#allocation2 + $0x10] sm:$0x3] %v1898_v20  ;;  %v1901_v23 = vld [vmem:[%s3023_s29 + $0x58] sm:$0x3]  ;;  %278 = vst [vmem:[#allocation2 + $0x28] sm:$0x3] %v1899_v21 }
  0x33   : > { %280 = vst [vmem:[#allocation2 + $0x40] sm:$0x3] %v1900_v22  ;;  %282 = vst [vmem:[#allocation2 + $0x58] sm:$0x3] %v1901_v23  ;;  %v1902_v24 = vld [vmem:[%s3023_s29 + $0x70] sm:$0x3] }
  0x34   : > { %v1903_v25 = vld [vmem:[%s3023_s29 + $0x88] sm:$0x3]  ;;  %v1904_v26 = vld [vmem:[%s3023_s29 + $0xa0] sm:$0x3]  ;;  %284 = vst [vmem:[#allocation2 + $0x70] sm:$0x3] %v1902_v24 }
  0x35   : > { %286 = vst [vmem:[#allocation2 + $0x88] sm:$0x3] %v1903_v25  ;;  %288 = vst [vmem:[#allocation2 + $0xa0] sm:$0x3] %v1904_v26  ;;  %v1905_v27 = vld [vmem:[%s3023_s29 + $0xb8] sm:$0x3] }
  0x36   : > { %v1906_v28 = vld [vmem:[%s3023_s29 + $0xd0] sm:$0x3]  ;;  %v1907_v29 = vld [vmem:[%s3023_s29 + $0xe8] sm:$0x3]  ;;  %290 = vst [vmem:[#allocation2 + $0xb8] sm:$0x3] %v1905_v27 }
  0x37   : > { %292 = vst [vmem:[#allocation2 + $0xd0] sm:$0x3] %v1906_v28  ;;  %294 = vst [vmem:[#allocation2 + $0xe8] sm:$0x3] %v1907_v29 }
  0x38   : > { %298 = vsyncadd [#allocation3], 2880 }
  0x39 PF: > { %s299_s5 = sadd.s32 1, %s2887_s15 }
  0x3a   : > { %p1908_p1 = scmp.ge.s32.totalorder %s299_s5, 2 }
  0x3b   : > { %s304_s6 = ssub.s32 (!%p1908_p1), 1, %s4157_s11  ;;  %s1794_s7 = smul.u32 (!%p1908_p1), 192, %s2887_s15 }
  0x3c   : > { %303 = sbr.rel (%p1908_p1) target bundleno = 85 (0x55), region = 69  ;;  %s4139_s0 = sld [smem:[#allocation14_spill]] (!%p1908_p1) }
  0x3d   : > { %s1795_s8 = smul.u32 (!%p1908_p1), 432, %s2891_s16  ;;  %s312_s5 = scalar_lea.sflag (!%p1908_p1), [#allocation3], %s304_s6 }
  0x3e   : > { %s310_s9 = smul.u32 (!%p1908_p1), 240, %s304_s6 }
  0x3f   : > { %s1796_s10 = sadd.s32 (!%p1908_p1), %s1795_s8, %s1794_s7 }
  0x40   : > { %s3069_s29 = scalar_lea.vmem (!%p1908_p1), [#allocation2], %s310_s9 }
  0x42   : > { %s3064_s28 = scalar_lea.vmem (!%p1908_p1), %s4139_s0, %s1796_s10 }
  0x43   : > { %v1910_v30 = vld [vmem:[%s3064_s28 + $0xc0] sm:$0xff]  ;;  %v1911_v31 = vld [vmem:[%s3064_s28 + $0xc8] sm:$0xff]  ;;  %v1912_v32 = vld [vmem:[%s3064_s28 + $0xd8] sm:$0xff] }
  0x44   : > { %369 = vst [vmem:[%s3069_s29] sm:$0xff] %v1910_v30  ;;  %371 = vst [vmem:[%s3069_s29 + $0x8] sm:$0xff] %v1911_v31  ;;  %v1913_v33 = vld [vmem:[%s3064_s28 + $0xe0] sm:$0xff]  ;;  %v1914_v34 = vld [vmem:[%s3064_s28 + $0xf0] sm:$0xff] }
  0x45   : > { %373 = vst [vmem:[%s3069_s29 + $0x18] sm:$0xff] %v1912_v32  ;;  %v1915_v35 = vld [vmem:[%s3064_s28 + $0xf8] sm:$0xff]  ;;  %375 = vst [vmem:[%s3069_s29 + $0x20] sm:$0xff] %v1913_v33  ;;  %v1916_v36 = vld [vmem:[%s3064_s28 + $0x108] sm:$0xff] }
  0x46   : > { %377 = vst [vmem:[%s3069_s29 + $0x30] sm:$0xff] %v1914_v34  ;;  %379 = vst [vmem:[%s3069_s29 + $0x38] sm:$0xff] %v1915_v35  ;;  %v1917_v37 = vld [vmem:[%s3064_s28 + $0x110] sm:$0xff]  ;;  %v1918_v38 = vld [vmem:[%s3064_s28 + $0x120] sm:$0xff] }
  0x47   : > { %381 = vst [vmem:[%s3069_s29 + $0x48] sm:$0xff] %v1916_v36  ;;  %383 = vst [vmem:[%s3069_s29 + $0x50] sm:$0xff] %v1917_v37  ;;  %v1919_v39 = vld [vmem:[%s3064_s28 + $0x128] sm:$0xff]  ;;  %v1920_v40 = vld [vmem:[%s3064_s28 + $0x138] sm:$0xff] }
  0x48   : > { %385 = vst [vmem:[%s3069_s29 + $0x60] sm:$0xff] %v1918_v38  ;;  %v1921_v41 = vld [vmem:[%s3064_s28 + $0x140] sm:$0xff]  ;;  %387 = vst [vmem:[%s3069_s29 + $0x68] sm:$0xff] %v1919_v39  ;;  %v1922_v42 = vld [vmem:[%s3064_s28 + $0x150] sm:$0xff] }
  0x49   : > { %389 = vst [vmem:[%s3069_s29 + $0x78] sm:$0xff] %v1920_v40  ;;  %391 = vst [vmem:[%s3069_s29 + $0x80] sm:$0xff] %v1921_v41  ;;  %v1923_v43 = vld [vmem:[%s3064_s28 + $0x158] sm:$0xff]  ;;  %v1924_v44 = vld [vmem:[%s3064_s28 + $0x168] sm:$0xff] }
  0x4a   : > { %393 = vst [vmem:[%s3069_s29 + $0x90] sm:$0xff] %v1922_v42  ;;  %395 = vst [vmem:[%s3069_s29 + $0x98] sm:$0xff] %v1923_v43  ;;  %v1925_v45 = vld [vmem:[%s3064_s28 + $0x170] sm:$0xff]  ;;  %v1926_v46 = vld [vmem:[%s3064_s28 + $0x180] sm:$0xff] }
  0x4b   : > { %397 = vst [vmem:[%s3069_s29 + $0xa8] sm:$0xff] %v1924_v44  ;;  %v1927_v47 = vld [vmem:[%s3064_s28 + $0x188] sm:$0xff]  ;;  %399 = vst [vmem:[%s3069_s29 + $0xb0] sm:$0xff] %v1925_v45  ;;  %v1928_v48 = vld [vmem:[%s3064_s28 + $0x198] sm:$0xff] }
  0x4c   : > { %401 = vst [vmem:[%s3069_s29 + $0xc0] sm:$0xff] %v1926_v46  ;;  %403 = vst [vmem:[%s3069_s29 + $0xc8] sm:$0xff] %v1927_v47  ;;  %v1929_v49 = vld [vmem:[%s3064_s28 + $0x1a0] sm:$0xff]  ;;  %v1930_v50 = vld [vmem:[%s3064_s28 + $0xd0] sm:$0x3] }
  0x4d   : > { %405 = vst [vmem:[%s3069_s29 + $0xd8] sm:$0xff] %v1928_v48  ;;  %407 = vst [vmem:[%s3069_s29 + $0xe0] sm:$0xff] %v1929_v49  ;;  %v1932_v51 = vld [vmem:[%s3064_s28 + $0xe8] sm:$0x3]  ;;  %v1934_v52 = vld [vmem:[%s3064_s28 + $0x100] sm:$0x3] }
  0x4e   : > { %1931 = vst [vmem:[%s3069_s29 + $0x10] sm:$0x3] %v1930_v50  ;;  %v1936_v53 = vld [vmem:[%s3064_s28 + $0x118] sm:$0x3]  ;;  %1933 = vst [vmem:[%s3069_s29 + $0x28] sm:$0x3] %v1932_v51 }
  0x4f   : > { %1935 = vst [vmem:[%s3069_s29 + $0x40] sm:$0x3] %v1934_v52  ;;  %1937 = vst [vmem:[%s3069_s29 + $0x58] sm:$0x3] %v1936_v53  ;;  %v1938_v54 = vld [vmem:[%s3064_s28 + $0x130] sm:$0x3] }
  0x50   : > { %v1940_v55 = vld [vmem:[%s3064_s28 + $0x148] sm:$0x3]  ;;  %v1942_v56 = vld [vmem:[%s3064_s28 + $0x160] sm:$0x3]  ;;  %1939 = vst [vmem:[%s3069_s29 + $0x70] sm:$0x3] %v1938_v54 }
  0x51   : > { %1941 = vst [vmem:[%s3069_s29 + $0x88] sm:$0x3] %v1940_v55  ;;  %1943 = vst [vmem:[%s3069_s29 + $0xa0] sm:$0x3] %v1942_v56  ;;  %v1944_v57 = vld [vmem:[%s3064_s28 + $0x178] sm:$0x3] }
  0x52   : > { %v1946_v58 = vld [vmem:[%s3064_s28 + $0x190] sm:$0x3]  ;;  %v1948_v59 = vld [vmem:[%s3064_s28 + $0x1a8] sm:$0x3]  ;;  %1945 = vst [vmem:[%s3069_s29 + $0xb8] sm:$0x3] %v1944_v57 }
  0x53   : > { %1947 = vst [vmem:[%s3069_s29 + $0xd0] sm:$0x3] %v1946_v58  ;;  %1949 = vst [vmem:[%s3069_s29 + $0xe8] sm:$0x3] %v1948_v59 }
  0x54   : > { %440 = vsyncadd %s312_s5, 2880 }
  0x55 PF: > { %s442_s7 = smul.u32 240, %s4157_s11  ;;  %s444_s9 = scalar_lea.sflag [#allocation3], %s4157_s11 }
  0x57   : > { %s3131_s8 = scalar_lea.vmem [#allocation2], %s442_s7 }
  0x58   : > { %2863 = dma.done.wait %s444_s9, 2880 }
  0x59   : > { %2864 = vsyncadd %s444_s9, 4294964416  ;;  %v667_v60 = vld [vmem:[%s4130_s1 + $0x80] sm:$0xff]  ;;  %v668_v61 = vld [vmem:[%s4130_s1 + $0x88] sm:$0xff]  ;;  %vm503_vm0 = vcmask 1046528   ;;  %vm560_vm1 = vcmask 1045504   ;;  %vm2906_vm2 = vmmov 0  }
  0x5a   : > { %v699_v62 = vld [vmem:[%s4130_s1 + $0x180] sm:$0xff]  ;;  %v2485_v63 = vpack.c.bf16 %v668_v61, %v667_v60  ;;  %v700_v0 = vld [vmem:[%s4130_s1 + $0x188] sm:$0xff]  ;;  %v669_v7 = vld [vmem:[%s4130_s1 + $0x90] sm:$0xff]  ;;  %s1964_s0 = sshll.u32 %s2891_s16, 5  ;;  %s1720_s23 = sshll.u32 %s3014_s20, 4  ;;  %s4042_s23 = int_to_ptr.vmem [resolvable:$true] %s1720_s23 }
  0x5b   : > { %v651_v1 = vld [vmem:[%s4130_s1] sm:$0xff]  ;;  %v652_v2 = vld [vmem:[%s4130_s1 + $0x8] sm:$0xff]  ;;  %v2517_v3 = vpack.c.bf16 %v700_v0, %v699_v62  ;;  %v670_v9 = vld [vmem:[%s4130_s1 + $0x98] sm:$0xff]  ;;  %s1699_s10 = scalar_lea.sflag [#allocation5], %s3005_s4  ;;  %s2775_s24 = scalar_lea.vmem %s4042_s23, 2048 }
  0x5c   : > { %v2487_v4 = vpack.c.bf16 %v652_v2, %v651_v1  ;;  %v683_v5 = vld [vmem:[%s4130_s1 + $0x100] sm:$0xff]  ;;  %v684_v6 = vld [vmem:[%s4130_s1 + $0x108] sm:$0xff]  ;;  %2486 = vmatprep.subr.bf16.mxu0 %v2485_v63  ;;  %v701_v10 = vld [vmem:[%s4130_s1 + $0x190] sm:$0xff]  ;;  %v2489_v12 = vpack.c.bf16 %v670_v9, %v669_v7  ;;  %p2776_p2 = scmp.ne.s32.totalorder %s4042_s23, %s2775_s24  ;;  %s2909_s27 = smov [#allocation4]  }
  0x5d   : > { %v2519_v8 = vpack.c.bf16 %v684_v6, %v683_v5  ;;  %v702_v11 = vld [vmem:[%s4130_s1 + $0x198] sm:$0xff]  ;;  %2518 = vmatprep.subr.bf16.mxu1 %v2517_v3  ;;  %v653_v14 = vld [vmem:[%s4130_s1 + $0x10] sm:$0xff]  ;;  %v671_v19 = vld [vmem:[%s4130_s1 + $0xa0] sm:$0xff]  ;;  %s2779_s28 = sshll.u32 %s2909_s27, 4  ;;  %s2780_s28 = int_to_ptr.vmem [resolvable:$false] %s2779_s28 }
  0x5e   : > { %2488 = vmatpush3.bf16.msra.mxu0 %v2487_v4  ;;  %v2521_v13 = vpack.c.bf16 %v702_v11, %v701_v10  ;;  %v654_v15 = vld [vmem:[%s4130_s1 + $0x18] sm:$0xff]  ;;  %v685_v16 = vld [vmem:[%s4130_s1 + $0x110] sm:$0xff]  ;;  %v672_v20 = vld [vmem:[%s4130_s1 + $0xa8] sm:$0xff]  ;;  %p2777_p4 = pnand %p2776_p2, %p2984_p3  ;;  %s2781_s29 = scalar_lea.vmem %s2780_s28, 4096 }
  0x5f   : > { %2520 = vmatpush3.bf16.msra.mxu1 %v2519_v8  ;;  %v2491_v17 = vpack.c.bf16 %v654_v15, %v653_v14  ;;  %v686_v18 = vld [vmem:[%s4130_s1 + $0x118] sm:$0xff]  ;;  %2490 = vmatprep.subr.bf16.mxu0 %v2489_v12  ;;  %v2493_v22 = vpack.c.bf16 %v672_v20, %v671_v19  ;;  %v703_v23 = vld [vmem:[%s4130_s1 + $0x1a0] sm:$0xff]  ;;  %v704_v24 = vld [vmem:[%s4130_s1 + $0x1a8] sm:$0xff]  ;;  %p2782_p6 = scmp.lt.s32.totalorder %s4042_s23, %s2780_s28  ;;  %p2783_p7 = scmp.lt.s32.totalorder %s2781_s29, %s2775_s24 }
  0x60   : > { %2522 = vmatprep.subr.bf16.mxu1 %v2521_v13  ;;  %v2523_v21 = vpack.c.bf16 %v686_v18, %v685_v16  ;;  %v655_v25 = vld [vmem:[%s4130_s1 + $0x20] sm:$0xff]  ;;  %v2525_v26 = vpack.c.bf16 %v704_v24, %v703_v23  ;;  %v656_v27 = vld [vmem:[%s4130_s1 + $0x28] sm:$0xff]  ;;  %v673_v31 = vld [vmem:[%s4130_s1 + $0xb0] sm:$0xff]  ;;  %p2778_p5 = pneg %p2777_p4 }
  0x61   : > { %v687_v28 = vld [vmem:[%s4130_s1 + $0x120] sm:$0xff]  ;;  %v688_v29 = vld [vmem:[%s4130_s1 + $0x128] sm:$0xff]  ;;  %v2495_v30 = vpack.c.bf16 %v656_v27, %v655_v25  ;;  %v674_v32 = vld [vmem:[%s4130_s1 + $0xb8] sm:$0xff]  ;;  %p2784_p9 = por %p2783_p7, %p2782_p6 }
  0x62   : > { %2492 = vmatpush3.bf16.msra.mxu0 %v2491_v17  ;;  %v705_v33 = vld [vmem:[%s4130_s1 + $0x1b0] sm:$0xff]  ;;  %v2527_v34 = vpack.c.bf16 %v688_v29, %v687_v28  ;;  %v2497_v35 = vpack.c.bf16 %v674_v32, %v673_v31  ;;  %v706_v36 = vld [vmem:[%s4130_s1 + $0x1b8] sm:$0xff]  ;;  %v675_v42 = vld [vmem:[%s4130_s1 + $0xc0] sm:$0xff] }
  0x63   : > { %2524 = vmatpush3.bf16.msra.mxu1 %v2523_v21  ;;  %2494 = vmatprep.subr.bf16.mxu0 %v2493_v22  ;;  %v657_v37 = vld [vmem:[%s4130_s1 + $0x30] sm:$0xff]  ;;  %v658_v38 = vld [vmem:[%s4130_s1 + $0x38] sm:$0xff]  ;;  %v2529_v39 = vpack.c.bf16 %v706_v36, %v705_v33  ;;  %v676_v43 = vld [vmem:[%s4130_s1 + $0xc8] sm:$0xff]  ;;  %p2785_p10 = pnand %p2784_p9, %p2778_p5 }
  0x64   : > { %2526 = vmatprep.subr.bf16.mxu1 %v2525_v26  ;;  %v689_v40 = vld [vmem:[%s4130_s1 + $0x130] sm:$0xff]  ;;  %v690_v41 = vld [vmem:[%s4130_s1 + $0x138] sm:$0xff]  ;;  %v707_v44 = vld [vmem:[%s4130_s1 + $0x1c0] sm:$0xff]  ;;  %v2499_v46 = vpack.c.bf16 %v658_v38, %v657_v37  ;;  %v2501_v48 = vpack.c.bf16 %v676_v43, %v675_v42 }
  0x65   : > { %v708_v45 = vld [vmem:[%s4130_s1 + $0x1c8] sm:$0xff]  ;;  %v2531_v47 = vpack.c.bf16 %v690_v41, %v689_v40  ;;  %v659_v49 = vld [vmem:[%s4130_s1 + $0x40] sm:$0xff]  ;;  %v677_v54 = vld [vmem:[%s4130_s1 + $0xd0] sm:$0xff] }
  0x66   : > { %2496 = vmatpush3.bf16.msra.mxu0 %v2495_v30  ;;  %v660_v50 = vld [vmem:[%s4130_s1 + $0x48] sm:$0xff]  ;;  %v691_v51 = vld [vmem:[%s4130_s1 + $0x140] sm:$0xff]  ;;  %v2533_v52 = vpack.c.bf16 %v708_v45, %v707_v44  ;;  %v678_v55 = vld [vmem:[%s4130_s1 + $0xd8] sm:$0xff] }
  0x67   : > { %2528 = vmatpush3.bf16.msra.mxu1 %v2527_v34  ;;  %2498 = vmatprep.subr.bf16.mxu0 %v2497_v35  ;;  %v692_v53 = vld [vmem:[%s4130_s1 + $0x148] sm:$0xff]  ;;  %v709_v56 = vld [vmem:[%s4130_s1 + $0x1d0] sm:$0xff]  ;;  %v710_v57 = vld [vmem:[%s4130_s1 + $0x1d8] sm:$0xff]  ;;  %v2503_v58 = vpack.c.bf16 %v660_v50, %v659_v49  ;;  %v2505_v60 = vpack.c.bf16 %v678_v55, %v677_v54 }
  0x68   : > { %2530 = vmatprep.subr.bf16.mxu1 %v2529_v39  ;;  %v2535_v59 = vpack.c.bf16 %v692_v53, %v691_v51  ;;  %v661_v61 = vld [vmem:[%s4130_s1 + $0x50] sm:$0xff]  ;;  %v662_v62 = vld [vmem:[%s4130_s1 + $0x58] sm:$0xff]  ;;  %v2537_v0 = vpack.c.bf16 %v710_v57, %v709_v56  ;;  %v679_v2 = vld [vmem:[%s4130_s1 + $0xe0] sm:$0xff] }
  0x69   : > { %v693_v63 = vld [vmem:[%s4130_s1 + $0x150] sm:$0xff]  ;;  %v694_v1 = vld [vmem:[%s4130_s1 + $0x158] sm:$0xff]  ;;  %v680_v3 = vld [vmem:[%s4130_s1 + $0xe8] sm:$0xff]  ;;  %v2507_v6 = vpack.c.bf16 %v662_v62, %v661_v61 }
  0x6a   : > { %2500 = vmatpush3.bf16.msra.mxu0 %v2499_v46  ;;  %v711_v4 = vld [vmem:[%s4130_s1 + $0x1e0] sm:$0xff]  ;;  %v712_v5 = vld [vmem:[%s4130_s1 + $0x1e8] sm:$0xff]  ;;  %v2539_v10 = vpack.c.bf16 %v694_v1, %v693_v63  ;;  %v2509_v11 = vpack.c.bf16 %v680_v3, %v679_v2  ;;  %v681_v16 = vld [vmem:[%s4130_s1 + $0xf0] sm:$0xff] }
  0x6b   : > { %2532 = vmatpush3.bf16.msra.mxu1 %v2531_v47  ;;  %2502 = vmatprep.subr.bf16.mxu0 %v2501_v48  ;;  %v663_v7 = vld [vmem:[%s4130_s1 + $0x60] sm:$0xff]  ;;  %v664_v8 = vld [vmem:[%s4130_s1 + $0x68] sm:$0xff]  ;;  %v2541_v15 = vpack.c.bf16 %v712_v5, %v711_v4  ;;  %v682_v17 = vld [vmem:[%s4130_s1 + $0xf8] sm:$0xff] }
  0x6c   : > { %2534 = vmatprep.subr.bf16.mxu1 %v2533_v52  ;;  %v695_v9 = vld [vmem:[%s4130_s1 + $0x160] sm:$0xff]  ;;  %v696_v12 = vld [vmem:[%s4130_s1 + $0x168] sm:$0xff]  ;;  %v713_v21 = vld [vmem:[%s4130_s1 + $0x1f0] sm:$0xff]  ;;  %v2511_v23 = vpack.c.bf16 %v664_v8, %v663_v7  ;;  %v2513_v26 = vpack.c.bf16 %v682_v17, %v681_v16 }
  0x6d   : > { %v3303_v13 = vld [vmem:[%s3131_s8] sm:$0xff]  ;;  %v3306_v14 = vld [vmem:[%s3131_s8 + $0x8] sm:$0xff]  ;;  %v3317_v20 = vld [vmem:[%s3131_s8 + $0x18] sm:$0xff]  ;;  %v2543_v25 = vpack.c.bf16 %v696_v12, %v695_v9 }
  0x6e   : > { %2504 = vmatpush3.bf16.msra.mxu0 %v2503_v58  ;;  %v504_v18 = vrot.slane %v3303_v13, 1  ;;  %v505_v19 = vrot.slane %v3306_v14, 1  ;;  %v714_v22 = vld [vmem:[%s4130_s1 + $0x1f8] sm:$0xff]  ;;  %1004 = vmatprep.mubr.f32.mxu1 %v3317_v20  ;;  %v665_v27 = vld [vmem:[%s4130_s1 + $0x70] sm:$0xff]  ;;  %v561_v34 = vrot.slane %v3303_v13, 2  ;;  %v562_v35 = vrot.slane %v3306_v14, 2 }
  0x6f   : > { %2536 = vmatpush3.bf16.msra.mxu1 %v2535_v59  ;;  %2506 = vmatprep.subr.bf16.mxu0 %v2505_v60  ;;  %v666_v28 = vld [vmem:[%s4130_s1 + $0x78] sm:$0xff]  ;;  %v2545_v29 = vpack.c.bf16 %v714_v22, %v713_v21  ;;  %v697_v30 = vld [vmem:[%s4130_s1 + $0x170] sm:$0xff]  ;;  %v731_v36 = vld [vmem:[%s4130_s1 + $0x280] sm:$0xff]  ;;  %v509_v50 = vrot.slane %v3317_v20, 1  ;;  %v566_v4 = vrot.slane %v3317_v20, 2 }
  0x70   : > { %2538 = vmatprep.subr.bf16.mxu1 %v2537_v0  ;;  %v506_v24 = vsel %vm503_vm0, %v504_v18, %v505_v19  ;;  %v698_v31 = vld [vmem:[%s4130_s1 + $0x178] sm:$0xff]  ;;  %v451_v32 = vld [vmem:[%s3131_s8 + $0x10] sm:$0x3]  ;;  %v2515_v33 = vpack.c.bf16 %v666_v28, %v665_v27  ;;  %v732_v37 = vld [vmem:[%s4130_s1 + $0x288] sm:$0xff]  ;;  %v563_v48 = vsel %vm560_vm1, %v561_v34, %v562_v35 }
  0x71   : > { %859 = vmatprep.mubr.f32.mxu0 %v506_v24  ;;  %v2547_v38 = vpack.c.bf16 %v698_v31, %v697_v30  ;;  %v507_v39 = vrot.slane %v451_v32, 1  ;;  %v3349_v40 = vld [vmem:[%s3131_s8 + $0x20] sm:$0xff]  ;;  %v716_v42 = vld [vmem:[%s4130_s1 + $0x208] sm:$0xff]  ;;  %v2549_v45 = vpack.c.bf16 %v732_v37, %v731_v36  ;;  %v564_v49 = vrot.slane %v451_v32, 2  ;;  %v734_v52 = vld [vmem:[%s4130_s1 + $0x298] sm:$0xff] }
  0x72   : > { %2508 = vmatpush3.bf16.msra.mxu0 %v2507_v6  ;;  %v715_v41 = vld [vmem:[%s4130_s1 + $0x200] sm:$0xff]  ;;  %v764_v44 = vld [vmem:[%s4130_s1 + $0x388] sm:$0xff]  ;;  %v733_v51 = vld [vmem:[%s4130_s1 + $0x290] sm:$0xff]  ;;  %v510_v54 = vrot.slane %v3349_v40, 1  ;;  %v567_v5 = vrot.slane %v3349_v40, 2 }
  0x73   : > { %2540 = vmatpush3.bf16.msra.mxu1 %v2539_v10  ;;  %2510 = vmatprep.subr.bf16.mxu0 %v2509_v11  ;;  %v763_v43 = vld [vmem:[%s4130_s1 + $0x380] sm:$0xff]  ;;  %v748_v47 = vld [vmem:[%s4130_s1 + $0x308] sm:$0xff]  ;;  %v508_v53 = vsel %vm503_vm0, %v505_v19, %v507_v39  ;;  %v2551_v56 = vpack.c.bf16 %v716_v42, %v715_v41  ;;  %v765_v58 = vld [vmem:[%s4130_s1 + $0x390] sm:$0xff]  ;;  %v2553_v0 = vpack.c.bf16 %v734_v52, %v733_v51 }
  0x74   : > { %2542 = vmatprep.subr.bf16.mxu1 %v2541_v15  ;;  %v747_v46 = vld [vmem:[%s4130_s1 + $0x300] sm:$0xff]  ;;  %v3380_v55 = vld [vmem:[%s3131_s8 + $0x28] sm:$0x3]  ;;  %v2581_v57 = vpack.c.bf16 %v764_v44, %v763_v43  ;;  %v717_v61 = vld [vmem:[%s4130_s1 + $0x210] sm:$0xff]  ;;  %v565_v9 = vsel %vm560_vm1, %v562_v35, %v564_v49  ;;  %v3418_v10 = vsel %vm503_vm0, %v509_v50, %v510_v54 }
  0x75   : > { %v766_v59 = vld [vmem:[%s4130_s1 + $0x398] sm:$0xff]  ;;  %v2583_v60 = vpack.c.bf16 %v748_v47, %v747_v46  ;;  %v749_v63 = vld [vmem:[%s4130_s1 + $0x310] sm:$0xff]  ;;  %v735_v2 = vld [vmem:[%s4130_s1 + $0x2a0] sm:$0xff]  ;;  %v512_v12 = vrot.slane %v3380_v55, 1 }
  0x76   : > { %2512 = vmatpush3.bf16.msra.mxu0 %v2511_v23  ;;  %v718_v62 = vld [vmem:[%s4130_s1 + $0x218] sm:$0xff]  ;;  %v736_v3 = vld [vmem:[%s4130_s1 + $0x2a8] sm:$0xff]  ;;  %v2585_v6 = vpack.c.bf16 %v766_v59, %v765_v58  ;;  %v767_v7 = vld [vmem:[%s4130_s1 + $0x3a0] sm:$0xff] }
  0x77   : > { %2544 = vmatpush3.bf16.msra.mxu1 %v2543_v25  ;;  %2514 = vmatprep.subr.bf16.mxu0 %v2513_v26  ;;  %v750_v1 = vld [vmem:[%s4130_s1 + $0x318] sm:$0xff]  ;;  %v768_v8 = vld [vmem:[%s4130_s1 + $0x3a8] sm:$0xff]  ;;  %v3421_v11 = vld [vmem:[%s3131_s8 + $0x30] sm:$0xff]  ;;  %v2555_v15 = vpack.c.bf16 %v718_v62, %v717_v61  ;;  %v2557_v17 = vpack.c.bf16 %v736_v3, %v735_v2  ;;  %v569_v26 = vrot.slane %v3380_v55, 2 }
  0x78   : > { %2546 = vmatprep.subr.bf16.mxu1 %v2545_v29  ;;  %v2587_v16 = vpack.c.bf16 %v750_v1, %v749_v63  ;;  %v719_v18 = vld [vmem:[%s4130_s1 + $0x220] sm:$0xff]  ;;  %v720_v19 = vld [vmem:[%s4130_s1 + $0x228] sm:$0xff]  ;;  %v2589_v22 = vpack.c.bf16 %v768_v8, %v767_v7  ;;  %v737_v24 = vld [vmem:[%s4130_s1 + $0x2b0] sm:$0xff]  ;;  %v3459_v29 = vsel %vm503_vm0, %v510_v54, %v512_v12  ;;  %v514_v30 = vrot.slane %v3421_v11, 1 }
  0x79   : > { %v751_v21 = vld [vmem:[%s4130_s1 + $0x320] sm:$0xff]  ;;  %v752_v23 = vld [vmem:[%s4130_s1 + $0x328] sm:$0xff]  ;;  %v738_v25 = vld [vmem:[%s4130_s1 + $0x2b8] sm:$0xff]  ;;  %v3497_v47 = vsel %vm560_vm1, %v567_v5, %v569_v26 }
  0x7a   : > { %2516 = vmatpush3.bf16.msra.mxu0 %v2515_v33  ;;  %v769_v27 = vld [vmem:[%s4130_s1 + $0x3b0] sm:$0xff]  ;;  %v770_v28 = vld [vmem:[%s4130_s1 + $0x3b8] sm:$0xff]  ;;  %v2559_v33 = vpack.c.bf16 %v720_v19, %v719_v18  ;;  %v2591_v34 = vpack.c.bf16 %v752_v23, %v751_v21  ;;  %v2561_v35 = vpack.c.bf16 %v738_v25, %v737_v24  ;;  %v739_v42 = vld [vmem:[%s4130_s1 + $0x2c0] sm:$0xff] }
  0x7b   : > { %2548 = vmatpush3.bf16.msra.mxu1 %v2547_v38  ;;  %2550 = vmatprep.subr.bf16.mxu0 %v2549_v45  ;;  %v3464_v32 = vld [vmem:[%s3131_s8 + $0x40] sm:$0x3]  ;;  %v722_v37 = vld [vmem:[%s4130_s1 + $0x238] sm:$0xff]  ;;  %v2593_v39 = vpack.c.bf16 %v770_v28, %v769_v27  ;;  %v740_v43 = vld [vmem:[%s4130_s1 + $0x2c8] sm:$0xff] }
  0x7c   : > { %2582 = vmatprep.subr.bf16.mxu1 %v2581_v57  ;;  %v721_v36 = vld [vmem:[%s4130_s1 + $0x230] sm:$0xff]  ;;  %v754_v41 = vld [vmem:[%s4130_s1 + $0x338] sm:$0xff]  ;;  %v771_v45 = vld [vmem:[%s4130_s1 + $0x3c0] sm:$0xff]  ;;  %v517_v50 = vrot.slane %v3464_v32, 1  ;;  %v2565_v54 = vpack.c.bf16 %v740_v43, %v739_v42 }
  0x7d   : > { %860 = vmatmul.mubr.f32.vlgmr.msra.gmra.mrb[0].mxu0 %v3303_v13  ;;  %v3425_v13 = vld [vmem:[%s3131_s8 + $0x38] sm:$0xff]  ;;  %v753_v38 = vld [vmem:[%s4130_s1 + $0x330] sm:$0xff]  ;;  %v3503_v49 = vld [vmem:[%s3131_s8 + $0x48] sm:$0xff]  ;;  %v2563_v52 = vpack.c.bf16 %v722_v37, %v721_v36 }
  0x7e   : > { %1005 = vmatmul.mubr.f32.vlgmr.msra.gmra.mrb[0].mxu1 %v563_v48  ;;  %864 = vmatprep.mubr.f32.mxu0 %v508_v53  ;;  %v515_v31 = vrot.slane %v3425_v13, 1  ;;  %v572_v44 = vrot.slane %v3425_v13, 2  ;;  %v772_v46 = vld [vmem:[%s4130_s1 + $0x3c8] sm:$0xff]  ;;  %v3507_v51 = vld [vmem:[%s3131_s8 + $0x50] sm:$0xff]  ;;  %v2595_v53 = vpack.c.bf16 %v754_v41, %v753_v38  ;;  %v742_v61 = vld [vmem:[%s4130_s1 + $0x2d8] sm:$0xff]  ;;  %v519_v62 = vrot.slane %v3503_v49, 1 }
  0x7f   : > { %1009 = vmatprep.mubr.f32.mxu1 %v3349_v40  ;;  %2552 = vmatpush3.bf16.msra.mxu0 %v2551_v56  ;;  %v723_v55 = vld [vmem:[%s4130_s1 + $0x240] sm:$0xff]  ;;  %v724_v56 = vld [vmem:[%s4130_s1 + $0x248] sm:$0xff]  ;;  %v2597_v58 = vpack.c.bf16 %v772_v46, %v771_v45  ;;  %v773_v63 = vld [vmem:[%s4130_s1 + $0x3d0] sm:$0xff]  ;;  %v520_v3 = vrot.slane %v3507_v51, 1  ;;  %v576_v19 = vrot.slane %v3503_v49, 2  ;;  %v577_v21 = vrot.slane %v3507_v51, 2 }
  0x80   : > { %2584 = vmatpush3.bf16.msra.mxu1 %v2583_v60  ;;  %2554 = vmatprep.subr.bf16.mxu0 %v2553_v0  ;;  %v3500_v48 = vsel %vm503_vm0, %v514_v30, %v515_v31  ;;  %v755_v57 = vld [vmem:[%s4130_s1 + $0x340] sm:$0xff]  ;;  %v756_v59 = vld [vmem:[%s4130_s1 + $0x348] sm:$0xff]  ;;  %v741_v60 = vld [vmem:[%s4130_s1 + $0x2d0] sm:$0xff]  ;;  %v3543_v2 = vsel %vm503_vm0, %v515_v31, %v517_v50 }
  0x81   : > { %865 = vmatmul.mubr.f32.gmra.mrb[2].mxu0 %v3306_v14  ;;  %2586 = vmatprep.subr.bf16.mxu1 %v2585_v6  ;;  %v3448_v14 = vsel %vm560_vm1, %v566_v4, %v567_v5  ;;  %v774_v0 = vld [vmem:[%s4130_s1 + $0x3d8] sm:$0xff]  ;;  %v2567_v5 = vpack.c.bf16 %v724_v56, %v723_v55  ;;  %v2599_v6 = vpack.c.bf16 %v756_v59, %v755_v57  ;;  %v725_v8 = vld [vmem:[%s4130_s1 + $0x250] sm:$0xff]  ;;  %v744_v18 = vld [vmem:[%s4130_s1 + $0x2e8] sm:$0xff] }
  0x82   : > { %1010 = vmatmul.mubr.f32.gmra.mrb[2].mxu1 %v565_v9  ;;  %869 = vmatprep.mubr.f32.mxu0 %v3418_v10  ;;  %v3547_v4 = vld [vmem:[%s3131_s8 + $0x58] sm:$0x3]  ;;  %v2569_v7 = vpack.c.bf16 %v742_v61, %v741_v60  ;;  %v757_v12 = vld [vmem:[%s4130_s1 + $0x350] sm:$0xff]  ;;  %v3583_v25 = vsel %vm503_vm0, %v519_v62, %v520_v3  ;;  %v3590_v28 = vld [vmem:[%s3131_s8 + $0x68] sm:$0xff]  ;;  %v3614_v41 = vsel %vm560_vm1, %v576_v19, %v577_v21 }
  0x83   : > { %1014 = vmatprep.mubr.f32.mxu1 %v3421_v11  ;;  %2556 = vmatpush3.bf16.msra.mxu0 %v2555_v15  ;;  %v726_v9 = vld [vmem:[%s4130_s1 + $0x258] sm:$0xff]  ;;  %v2601_v15 = vpack.c.bf16 %v774_v0, %v773_v63  ;;  %v776_v23 = vld [vmem:[%s4130_s1 + $0x3e8] sm:$0xff]  ;;  %v3586_v26 = vld [vmem:[%s3131_s8 + $0x60] sm:$0xff]  ;;  %v522_v27 = vrot.slane %v3547_v4, 1  ;;  %v579_v42 = vrot.slane %v3547_v4, 2  ;;  %v525_v46 = vrot.slane %v3590_v28, 1 }
  0x84   : > { %2588 = vmatpush3.bf16.msra.mxu1 %v2587_v16  ;;  %2558 = vmatprep.subr.bf16.mxu0 %v2557_v17  ;;  %v758_v16 = vld [vmem:[%s4130_s1 + $0x358] sm:$0xff]  ;;  %v743_v17 = vld [vmem:[%s4130_s1 + $0x2e0] sm:$0xff]  ;;  %v2571_v30 = vpack.c.bf16 %v726_v9, %v725_v8  ;;  %v760_v37 = vld [vmem:[%s4130_s1 + $0x368] sm:$0xff]  ;;  %v524_v45 = vrot.slane %v3586_v26, 1  ;;  %v581_v62 = vrot.slane %v3586_v26, 2  ;;  %v582_v0 = vrot.slane %v3590_v28, 2 }
  0x85   : > { %870 = vmatmul.mubr.f32.gmra.mrb[4].mxu0 %v3317_v20  ;;  %2590 = vmatprep.subr.bf16.mxu1 %v2589_v22  ;;  %v571_v20 = vrot.slane %v3421_v11, 2  ;;  %v775_v22 = vld [vmem:[%s4130_s1 + $0x3e0] sm:$0xff]  ;;  %v2603_v31 = vpack.c.bf16 %v758_v16, %v757_v12  ;;  %v745_v38 = vld [vmem:[%s4130_s1 + $0x2f0] sm:$0xff]  ;;  %v730_v56 = vld [vmem:[%s4130_s1 + $0x278] sm:$0xff] }
  0x86   : > { %1015 = vmatmul.mubr.f32.gmra.mrb[4].mxu1 %v3448_v14  ;;  %874 = vmatprep.mubr.f32.mxu0 %v3459_v29  ;;  %v2605_v36 = vpack.c.bf16 %v776_v23, %v775_v22  ;;  %v777_v43 = vld [vmem:[%s4130_s1 + $0x3f0] sm:$0xff]  ;;  %v762_v59 = vld [vmem:[%s4130_s1 + $0x378] sm:$0xff]  ;;  %v779_v60 = vld [vmem:[%s4130_s1 + $0x400] sm:$0xff]  ;;  %v3657_v63 = vsel %vm503_vm0, %v524_v45, %v525_v46  ;;  %v3673_v12 = vsel %vm560_vm1, %v581_v62, %v582_v0 }
  0x87   : > { %1019 = vmatprep.mubr.f32.mxu1 %v3425_v13  ;;  %2560 = vmatpush3.bf16.msra.mxu0 %v2559_v33  ;;  %v3540_v1 = vsel %vm560_vm1, %v571_v20, %v572_v44  ;;  %v727_v33 = vld [vmem:[%s4130_s1 + $0x260] sm:$0xff]  ;;  %v778_v20 = vld [vmem:[%s4130_s1 + $0x3f8] sm:$0xff]  ;;  %v729_v55 = vld [vmem:[%s4130_s1 + $0x270] sm:$0xff] }
  0x88   : > { %2592 = vmatpush3.bf16.msra.mxu1 %v2591_v34  ;;  %2562 = vmatprep.subr.bf16.mxu0 %v2561_v35  ;;  %v728_v34 = vld [vmem:[%s4130_s1 + $0x268] sm:$0xff]  ;;  %v759_v35 = vld [vmem:[%s4130_s1 + $0x360] sm:$0xff]  ;;  %v761_v57 = vld [vmem:[%s4130_s1 + $0x370] sm:$0xff]  ;;  %v2579_v4 = vpack.c.bf16 %v730_v56, %v729_v55 }
  0x89   : > { %875 = vmatmul.mubr.f32.gmra.mrb[6].mxu0 %v3349_v40  ;;  %2594 = vmatprep.subr.bf16.mxu1 %v2593_v39  ;;  %v574_v40 = vrot.slane %v3464_v32, 2  ;;  %v2573_v32 = vpack.c.bf16 %v744_v18, %v743_v17  ;;  %v746_v39 = vld [vmem:[%s4130_s1 + $0x2f8] sm:$0xff]  ;;  %v463_v50 = vld [vmem:[%s3131_s8 + $0x70] sm:$0x3]  ;;  %v780_v61 = vld [vmem:[%s4130_s1 + $0x408] sm:$0xff] }
  0x8a   : > { %1020 = vmatmul.mubr.f32.gmra.mrb[6].mxu1 %v3497_v47  ;;  %879 = vmatprep.mubr.f32.mxu0 %v3500_v48  ;;  %v3666_v8 = vpack.c.bf16 %v780_v61, %v779_v60  ;;  %v584_v9 = vrot.slane %v463_v50, 2  ;;  %v466_v18 = vld [vmem:[%s3131_s8 + $0x88] sm:$0x3]  ;;  %v472_v56 = vld [vmem:[%s3131_s8 + $0xb8] sm:$0x3]  ;;  %v3757_v62 = vld [vmem:[%s3131_s8 + $0xc0] sm:$0xff] }
  0x8b   : > { %1024 = vmatprep.mubr.f32.mxu1 %v3503_v49  ;;  %2564 = vmatpush3.bf16.msra.mxu0 %v2563_v52  ;;  %v3580_v24 = vsel %vm560_vm1, %v572_v44, %v574_v40  ;;  %v3625_v44 = vsel %vm503_vm0, %v520_v3, %v522_v27  ;;  %v2575_v52 = vpack.c.bf16 %v728_v34, %v727_v33  ;;  %v527_v3 = vrot.slane %v463_v50, 1  ;;  %v3726_v45 = vld [vmem:[%s3131_s8 + $0xa8] sm:$0xff] }
  0x8c   : > { %2596 = vmatpush3.bf16.msra.mxu1 %v2595_v53  ;;  %2566 = vmatprep.subr.bf16.mxu0 %v2565_v54  ;;  %v2607_v53 = vpack.c.bf16 %v760_v37, %v759_v35  ;;  %v2577_v54 = vpack.c.bf16 %v746_v39, %v745_v38  ;;  %v3652_v40 = vsel %vm560_vm1, %v577_v21, %v579_v42  ;;  %v532_v27 = vrot.slane %v466_v18, 1  ;;  %v469_v37 = vld [vmem:[%s3131_s8 + $0xa0] sm:$0x3] }
  0x8d   : > { %880 = vmatmul.mubr.f32.gmra.mrb[8].mxu0 %v3421_v11  ;;  %2598 = vmatprep.subr.bf16.mxu1 %v2597_v58  ;;  %v2609_v58 = vpack.c.bf16 %v778_v20, %v777_v43  ;;  %v3686_v19 = vsel %vm560_vm1, %v582_v0, %v584_v9  ;;  %v537_v20 = vrot.slane %v469_v37, 1  ;;  %v594_v50 = vrot.slane %v469_v37, 2 }
  0x8e   : > { %1025 = vmatmul.mubr.f32.gmra.mrb[8].mxu1 %v3540_v1  ;;  %884 = vmatprep.mubr.f32.mxu0 %v3543_v2  ;;  %v542_v61 = vrot.slane %v472_v56, 1 }
  0x8f   : > { %1029 = vmatprep.mubr.f32.mxu1 %v3507_v51  ;;  %2568 = vmatpush3.bf16.msra.mxu0 %v2567_v5  ;;  %v3661_v5 = vld [vmem:[%s3131_s8 + $0x78] sm:$0xff] }
  0x90   : > { %2600 = vmatpush3.bf16.msra.mxu1 %v2599_v6  ;;  %2570 = vmatprep.subr.bf16.mxu0 %v2569_v7  ;;  %v3664_v6 = vld [vmem:[%s3131_s8 + $0x80] sm:$0xff]  ;;  %v2611_v7 = vpack.c.bf16 %v762_v59, %v761_v57  ;;  %v529_v16 = vrot.slane %v3661_v5, 1  ;;  %v586_v22 = vrot.slane %v3661_v5, 2  ;;  %v596_v59 = vrot.slane %v3726_v45, 2 }
  0x91   : > { %885 = vmatmul.mubr.f32.gmra.mrb[10].mxu0 %v3425_v13  ;;  %2602 = vmatprep.subr.bf16.mxu1 %v2601_v15  ;;  %v3676_v15 = vsel %vm503_vm0, %v525_v46, %v527_v3  ;;  %v530_v17 = vrot.slane %v3664_v6, 1  ;;  %v587_v23 = vrot.slane %v3664_v6, 2  ;;  %v3729_v46 = vld [vmem:[%s3131_s8 + $0xb0] sm:$0xff] }
  0x92   : > { %1030 = vmatmul.mubr.f32.gmra.mrb[10].mxu1 %v3580_v24  ;;  %889 = vmatprep.mubr.f32.mxu0 %v3583_v25  ;;  %v540_v55 = vrot.slane %v3729_v46, 1  ;;  %v597_v60 = vrot.slane %v3729_v46, 2 }
  0x93   : > { %1034 = vmatprep.mubr.f32.mxu1 %v3586_v26  ;;  %2572 = vmatpush3.bf16.msra.mxu0 %v2571_v30  ;;  %v3690_v21 = vsel %vm503_vm0, %v529_v16, %v530_v17  ;;  %v3695_v30 = vld [vmem:[%s3131_s8 + $0x90] sm:$0xff]  ;;  %v3705_v33 = vsel %vm560_vm1, %v586_v22, %v587_v23  ;;  %v3708_v34 = vsel %vm503_vm0, %v530_v17, %v532_v27  ;;  %v782_v17 = vld [vmem:[%s4130_s1 + $0x418] sm:$0xff] }
  0x94   : > { %2604 = vmatpush3.bf16.msra.mxu1 %v2603_v31  ;;  %2574 = vmatprep.subr.bf16.mxu0 %v2573_v32  ;;  %v3698_v31 = vld [vmem:[%s3131_s8 + $0x98] sm:$0xff]  ;;  %v589_v32 = vrot.slane %v466_v18, 2  ;;  %v534_v35 = vrot.slane %v3695_v30, 1  ;;  %v591_v42 = vrot.slane %v3695_v30, 2  ;;  %v3764_v0 = vsel %vm560_vm1, %v596_v59, %v597_v60  ;;  %v781_v16 = vld [vmem:[%s4130_s1 + $0x410] sm:$0xff]  ;;  %v783_v22 = vld [vmem:[%s4130_s1 + $0x420] sm:$0xff] }
  0x95   : > { %890 = vmatmul.mubr.f32.gmra.mrb[12].mxu0 %v3503_v49  ;;  %2606 = vmatprep.subr.bf16.mxu1 %v2605_v36  ;;  %v535_v36 = vrot.slane %v3698_v31, 1  ;;  %v592_v43 = vrot.slane %v3698_v31, 2  ;;  %v3767_v3 = vsel %vm503_vm0, %v540_v55, %v542_v61  ;;  %v2617_v18 = vpack.c.bf16 %v782_v17, %v781_v16  ;;  %v786_v27 = vld [vmem:[%s4130_s1 + $0x438] sm:$0xff] }
  0x96   : > { %1035 = vmatmul.mubr.f32.gmra.mrb[12].mxu1 %v3614_v41  ;;  %894 = vmatprep.mubr.f32.mxu0 %v3625_v44  ;;  %v3717_v38 = vsel %vm560_vm1, %v587_v23, %v589_v32  ;;  %v784_v23 = vld [vmem:[%s4130_s1 + $0x428] sm:$0xff]  ;;  %v2905_v61 = vmov 0.0|0.0  }
  0x97   : > { %1039 = vmatprep.mubr.f32.mxu1 %v3590_v28  ;;  %2576 = vmatpush3.bf16.msra.mxu0 %v2575_v52  ;;  %v3721_v39 = vsel %vm503_vm0, %v534_v35, %v535_v36  ;;  %v3736_v52 = vsel %vm560_vm1, %v591_v42, %v592_v43  ;;  %v3748_v57 = vsel %vm560_vm1, %v592_v43, %v594_v50  ;;  %v792_v32 = vld [vmem:[%s4130_s1 + $0x468] sm:$0xff]  ;;  %v794_v35 = vld [vmem:[%s4130_s1 + $0x478] sm:$0xff] }
  0x98   : > { %2608 = vmatpush3.bf16.msra.mxu1 %v2607_v53  ;;  %2578 = vmatprep.subr.bf16.mxu0 %v2577_v54  ;;  %v3739_v53 = vsel %vm503_vm0, %v535_v36, %v537_v20  ;;  %v539_v54 = vrot.slane %v3726_v45, 1 }
  0x99   : > { %895 = vmatmul.mubr.f32.gmra.mrb[14].mxu0 %v3507_v51  ;;  %2610 = vmatprep.subr.bf16.mxu1 %v2609_v58 }
  0x9a   : > { %1040 = vmatmul.mubr.f32.gmra.mrb[14].mxu1 %v3652_v40  ;;  %899 = vmatprep.mubr.f32.mxu0 %v3657_v63  ;;  %v3752_v58 = vsel %vm503_vm0, %v539_v54, %v540_v55 }
  0x9b   : > { %1044 = vmatprep.mubr.f32.mxu1 %v3661_v5  ;;  %2580 = vmatpush3.bf16.msra.mxu0 %v2579_v4  ;;  %v599_v4 = vrot.slane %v472_v56, 2 }
  0x9c   : > { %2612 = vmatpush3.bf16.msra.mxu1 %v2611_v7  ;;  %2614 = vmatprep.subr.bf16.mxu0 %v3666_v8  ;;  %v3770_v7 = vld [vmem:[%s3131_s8 + $0xc8] sm:$0xff] }
  0x9d   : > { %900 = vmatmul.mubr.f32.gmra.mrb[16].mxu0 %v3586_v26  ;;  %v3777_v9 = vsel %vm560_vm1, %v597_v60, %v599_v4  ;;  %2645 = vmatprep.subr.bf16.mxu1 %v2905_v61 }
  0x9e   : > { %1045 = vmatmul.mubr.f32.gmra.mrb[16].mxu1 %v3673_v12  ;;  %904 = vmatprep.mubr.f32.mxu0 %v3676_v15 }
  0x9f   : > { %1049 = vmatprep.mubr.f32.mxu1 %v3664_v6 }
  0xa1   : > { %905 = vmatmul.mubr.f32.gmra.mrb[18].mxu0 %v3590_v28 }
  0xa2   : > { %1050 = vmatmul.mubr.f32.gmra.mrb[18].mxu1 %v3686_v19  ;;  %909 = vmatprep.mubr.f32.mxu0 %v3690_v21 }
  0xa3   : > { %1054 = vmatprep.mubr.f32.mxu1 %v3695_v30 }
  0xa5   : > { %910 = vmatmul.mubr.f32.gmra.mrb[20].mxu0 %v3661_v5 }
  0xa6   : > { %1055 = vmatmul.mubr.f32.gmra.mrb[20].mxu1 %v3705_v33  ;;  %914 = vmatprep.mubr.f32.mxu0 %v3708_v34 }
  0xa7   : > { %1059 = vmatprep.mubr.f32.mxu1 %v3698_v31 }
  0xa9   : > { %915 = vmatmul.mubr.f32.gmra.mrb[22].mxu0 %v3664_v6 }
  0xaa   : > { %1060 = vmatmul.mubr.f32.gmra.mrb[22].mxu1 %v3717_v38  ;;  %919 = vmatprep.mubr.f32.mxu0 %v3721_v39 }
  0xab   : > { %1064 = vmatprep.mubr.f32.mxu1 %v3726_v45 }
  0xad   : > { %920 = vmatmul.mubr.f32.gmra.mrb[24].mxu0 %v3695_v30 }
  0xae   : > { %1065 = vmatmul.mubr.f32.gmra.mrb[24].mxu1 %v3736_v52  ;;  %924 = vmatprep.mubr.f32.mxu0 %v3739_v53 }
  0xaf   : > { %1069 = vmatprep.mubr.f32.mxu1 %v3729_v46 }
  0xb1   : > { %925 = vmatmul.mubr.f32.gmra.mrb[26].mxu0 %v3698_v31 }
  0xb2   : > { %1070 = vmatmul.mubr.f32.gmra.mrb[26].mxu1 %v3748_v57  ;;  %929 = vmatprep.mubr.f32.mxu0 %v3752_v58 }
  0xb3   : > { %1074 = vmatprep.mubr.f32.mxu1 %v3757_v62 }
  0xb5   : > { %930 = vmatmul.mubr.f32.gmra.mrb[28].mxu0 %v3726_v45 }
  0xb6   : > { %1075 = vmatmul.mubr.f32.gmra.mrb[28].mxu1 %v3764_v0  ;;  %934 = vmatprep.mubr.f32.mxu0 %v3767_v3 }
  0xb7   : > { %1079 = vmatprep.mubr.f32.mxu1 %v3770_v7 }
  0xb9   : > { %935 = vmatmul.mubr.f32.gmra.mrb[30].mxu0 %v3729_v46 }
  0xba   : > { %1080 = vmatmul.mubr.f32.gmra.mrb[30].mxu1 %v3777_v9  ;;  %1149 = vmatprep.mubr.f32.mxu0 %v3448_v14  ;;  %v2621_v14 = vpack.c.bf16 %v784_v23, %v783_v22 }
  0xbb   : > { %1294 = vmatprep.mubr.f32.mxu1 %v3500_v48 }
  0xbd   : > { %1150 = vmatmul.mubr.f32.vlgmr.msra.gmra.mrb[32].mxu0 %v3418_v10  ;;  %v785_v10 = vld [vmem:[%s4130_s1 + $0x430] sm:$0xff] }
  0xbe   : > { %1295 = vmatmul.mubr.f32.vlgmr.msra.gmra.mrb[32].mxu1 %v3421_v11  ;;  %1154 = vmatprep.mubr.f32.mxu0 %v3497_v47  ;;  %v2625_v11 = vpack.c.bf16 %v786_v27, %v785_v10  ;;  %v788_v47 = vld [vmem:[%s4130_s1 + $0x448] sm:$0xff] }
  0xbf   : > { %1299 = vmatprep.mubr.f32.mxu1 %v3543_v2  ;;  %2616 = vmatpush3.bf16.msra.mxu0 %v3666_v8  ;;  %v790_v8 = vld [vmem:[%s4130_s1 + $0x458] sm:$0xff] }
  0xc0   : > { %2618 = vmatprep.subr.bf16.mxu0 %v2617_v18 }
  0xc1   : > { %1155 = vmatmul.mubr.f32.gmra.mrb[34].mxu0 %v3459_v29  ;;  %v787_v29 = vld [vmem:[%s4130_s1 + $0x440] sm:$0xff] }
  0xc2   : > { %1300 = vmatmul.mubr.f32.gmra.mrb[34].mxu1 %v3425_v13  ;;  %1159 = vmatprep.mubr.f32.mxu0 %v3540_v1  ;;  %v2629_v13 = vpack.c.bf16 %v788_v47, %v787_v29 }
  0xc3   : > { %1304 = vmatprep.mubr.f32.mxu1 %v3583_v25  ;;  %2620 = vmatpush3.bf16.msra.mxu0 %v2617_v18 }
  0xc4   : > { %2622 = vmatprep.subr.bf16.mxu0 %v2621_v14 }
  0xc5   : > { %1160 = vmatmul.mubr.f32.gmra.mrb[36].mxu0 %v3500_v48  ;;  %v789_v48 = vld [vmem:[%s4130_s1 + $0x450] sm:$0xff] }
  0xc6   : > { %1305 = vmatmul.mubr.f32.gmra.mrb[36].mxu1 %v3503_v49  ;;  %1164 = vmatprep.mubr.f32.mxu0 %v3580_v24  ;;  %v2633_v49 = vpack.c.bf16 %v790_v8, %v789_v48 }
  0xc7   : > { %1309 = vmatprep.mubr.f32.mxu1 %v3625_v44  ;;  %2624 = vmatpush3.bf16.msra.mxu0 %v2621_v14 }
  0xc8   : > { %2626 = vmatprep.subr.bf16.mxu0 %v2625_v11 }
  0xc9   : > { %1165 = vmatmul.mubr.f32.gmra.mrb[38].mxu0 %v3543_v2  ;;  %v791_v2 = vld [vmem:[%s4130_s1 + $0x460] sm:$0xff] }
  0xca   : > { %1310 = vmatmul.mubr.f32.gmra.mrb[38].mxu1 %v3507_v51  ;;  %1169 = vmatprep.mubr.f32.mxu0 %v3614_v41  ;;  %v2637_v51 = vpack.c.bf16 %v792_v32, %v791_v2 }
  0xcb   : > { %1314 = vmatprep.mubr.f32.mxu1 %v3657_v63  ;;  %2628 = vmatpush3.bf16.msra.mxu0 %v2625_v11 }
  0xcc   : > { %2630 = vmatprep.subr.bf16.mxu0 %v2629_v13 }
  0xcd   : > { %1170 = vmatmul.mubr.f32.gmra.mrb[40].mxu0 %v3583_v25  ;;  %v793_v25 = vld [vmem:[%s4130_s1 + $0x470] sm:$0xff] }
  0xce   : > { %1315 = vmatmul.mubr.f32.gmra.mrb[40].mxu1 %v3586_v26  ;;  %1174 = vmatprep.mubr.f32.mxu0 %v3652_v40  ;;  %v2641_v26 = vpack.c.bf16 %v794_v35, %v793_v25 }
  0xcf   : > { %1319 = vmatprep.mubr.f32.mxu1 %v3676_v15  ;;  %2632 = vmatpush3.bf16.msra.mxu0 %v2629_v13 }
  0xd0   : > { %2634 = vmatprep.subr.bf16.mxu0 %v2633_v49 }
  0xd1   : > { %1175 = vmatmul.mubr.f32.gmra.mrb[42].mxu0 %v3625_v44  ;;  %v621_v44 = vrot.slane %v3770_v7, 1 }
  0xd2   : > { %1320 = vmatmul.mubr.f32.gmra.mrb[42].mxu1 %v3590_v28  ;;  %1179 = vmatprep.mubr.f32.mxu0 %v3673_v12  ;;  %v620_v28 = vrot.slane %v3757_v62, 1 }
  0xd3   : > { %1324 = vmatprep.mubr.f32.mxu1 %v3690_v21  ;;  %2636 = vmatpush3.bf16.msra.mxu0 %v2633_v49 }
  0xd4   : > { %2638 = vmatprep.subr.bf16.mxu0 %v2637_v51 }
  0xd5   : > { %1180 = vmatmul.mubr.f32.gmra.mrb[44].mxu0 %v3657_v63  ;;  %v475_v63 = vld [vmem:[%s3131_s8 + $0xd0] sm:$0x3] }
  0xd6   : > { %1325 = vmatmul.mubr.f32.gmra.mrb[44].mxu1 %v3661_v5  ;;  %1184 = vmatprep.mubr.f32.mxu0 %v3686_v19  ;;  %v622_v5 = vsel %vm503_vm0, %v620_v28, %v621_v44  ;;  %v630_v43 = vrot.slane %v475_v63, 2 }
  0xd7   : > { %1329 = vmatprep.mubr.f32.mxu1 %v3708_v34  ;;  %2640 = vmatpush3.bf16.msra.mxu0 %v2637_v51 }
  0xd8   : > { %2642 = vmatprep.subr.bf16.mxu0 %v2641_v26 }
  0xd9   : > { %1185 = vmatmul.mubr.f32.gmra.mrb[46].mxu0 %v3676_v15  ;;  %v476_v15 = vld [vmem:[%s3131_s8 + $0xd8] sm:$0xff] }
  0xda   : > { %1330 = vmatmul.mubr.f32.gmra.mrb[46].mxu1 %v3664_v6  ;;  %1189 = vmatprep.mubr.f32.mxu0 %v3705_v33  ;;  %v623_v6 = vrot.slane %v475_v63, 1  ;;  %v637_v36 = vrot.slane %v476_v15, 1 }
  0xdb   : > { %1334 = vmatprep.mubr.f32.mxu1 %v3721_v39  ;;  %2644 = vmatpush3.bf16.msra.mxu0 %v2641_v26 }
  0xdc   : > { %2669 = vmatprep.subr.bf16.mxu0 %v2905_v61 }
  0xdd   : > { %1190 = vmatmul.mubr.f32.gmra.mrb[48].mxu0 %v3690_v21  ;;  %v477_v21 = vld [vmem:[%s3131_s8 + $0xe0] sm:$0xff] }
  0xde   : > { %1335 = vmatmul.mubr.f32.gmra.mrb[48].mxu1 %v3695_v30  ;;  %1194 = vmatprep.mubr.f32.mxu0 %v3717_v38  ;;  %v627_v30 = vrot.slane %v3757_v62, 2  ;;  %v638_v37 = vrot.slane %v477_v21, 1 }
  0xdf   : > { %1339 = vmatprep.mubr.f32.mxu1 %v3739_v53 }
  0xe0   : > { %v639_v20 = vsel %vm503_vm0, %v637_v36, %v638_v37 }
  0xe1   : > { %1195 = vmatmul.mubr.f32.gmra.mrb[50].mxu0 %v3708_v34  ;;  %v624_v34 = vsel %vm503_vm0, %v621_v44, %v623_v6 }
  0xe2   : > { %1340 = vmatmul.mubr.f32.gmra.mrb[50].mxu1 %v3698_v31  ;;  %1199 = vmatprep.mubr.f32.mxu0 %v3736_v52  ;;  %v628_v31 = vrot.slane %v3770_v7, 2 }
  0xe3   : > { %1344 = vmatprep.mubr.f32.mxu1 %v3752_v58 }
  0xe4   : > { %v629_v42 = vsel %vm560_vm1, %v627_v30, %v628_v31 }
  0xe5   : > { %1200 = vmatmul.mubr.f32.gmra.mrb[52].mxu0 %v3721_v39  ;;  %v478_v39 = vld [vmem:[%s3131_s8 + $0xe8] sm:$0x3]  ;;  %s1972_s8 = sshll.u32 %s2887_s15, 4 }
  0xe6   : > { %1345 = vmatmul.mubr.f32.gmra.mrb[52].mxu1 %v3726_v45  ;;  %1204 = vmatprep.mubr.f32.mxu0 %v3748_v57  ;;  %v640_v45 = vrot.slane %v478_v39, 1  ;;  %s1717_s6 = sadd.s32 %s1972_s8, %s1964_s0 }
  0xe7   : > { %1349 = vmatprep.mubr.f32.mxu1 %v3767_v3  ;;  %s1965_s5 = sshll.u32 %s1717_s6, 7 }
  0xe8   : > { %v641_v50 = vsel %vm503_vm0, %v638_v37, %v640_v45  ;;  %s4039_s9 = scalar_lea.hbm %s4131_s2, %s1965_s5 }
  0xe9   : > { %1205 = vmatmul.mubr.f32.gmra.mrb[54].mxu0 %v3739_v53 }
  0xea   : > { %1350 = vmatmul.mubr.f32.gmra.mrb[54].mxu1 %v3729_v46  ;;  %1209 = vmatprep.mubr.f32.mxu0 %v3764_v0  ;;  %v631_v46 = vsel %vm560_vm1, %v628_v31, %v630_v43 }
  0xeb   : > { %1354 = vmatprep.mubr.f32.mxu1 %v622_v5 }
  0xed   : > { %1210 = vmatmul.mubr.f32.gmra.mrb[56].mxu0 %v3752_v58 }
  0xee   : > { %1355 = vmatmul.mubr.f32.gmra.mrb[56].mxu1 %v3757_v62  ;;  %1214 = vmatprep.mubr.f32.mxu0 %v3777_v9 }
  0xef   : > { %1359 = vmatprep.mubr.f32.mxu1 %v624_v34 }
  0xf1   : > { %1215 = vmatmul.mubr.f32.gmra.mrb[58].mxu0 %v3767_v3 }
  0xf2   : > { %1360 = vmatmul.mubr.f32.gmra.mrb[58].mxu1 %v3770_v7  ;;  %1219 = vmatprep.mubr.f32.mxu0 %v629_v42 }
  0xf3   : > { %1364 = vmatprep.mubr.f32.mxu1 %v639_v20 }
  0xf5   : > { %1220 = vmatmul.mubr.f32.gmra.mrb[60].mxu0 %v622_v5 }
  0xf6   : > { %1365 = vmatmul.mubr.f32.gmra.mrb[60].mxu1 %v476_v15  ;;  %1224 = vmatprep.mubr.f32.mxu0 %v631_v46 }
  0xf7   : > { %1369 = vmatprep.mubr.f32.mxu1 %v641_v50 }
  0xf9   : > { %1225 = vmatmul.mubr.f32.gmra.mrb[62].mxu0 %v624_v34 }
  0xfa   : > { %1370 = vmatmul.mubr.f32.gmra.mrb[62].mxu1 %v477_v21  ;;  %2391 = vmatprep.mubr.f32.mxu0 %v3540_v1  ;;  %v644_v1 = vrot.slane %v476_v15, 2 }
  0xfd   : > { %2392 = vmatmul.mubr.f32.vlgmr.msra.gmra.mrb[64].mxu0 %v3580_v24  ;;  %v645_v24 = vrot.slane %v477_v21, 2 }
  0xfe   : > { %2394 = vmatprep.mubr.f32.mxu0 %v3614_v41  ;;  %v647_v41 = vrot.slane %v478_v39, 2 }
 0x101   : > { %2395 = vmatmul.mubr.f32.gmra.mrb[66].mxu0 %v3652_v40  ;;  %v646_v40 = vsel %vm560_vm1, %v644_v1, %v645_v24 }
 0x102   : > { %2397 = vmatprep.mubr.f32.mxu0 %v3673_v12  ;;  %v648_v12 = vsel %vm560_vm1, %v645_v24, %v647_v41 }
 0x105   : > { %2398 = vmatmul.mubr.f32.gmra.mrb[68].mxu0 %v3686_v19 }
 0x106   : > { %2400 = vmatprep.mubr.f32.mxu0 %v3705_v33 }
 0x109   : > { %2401 = vmatmul.mubr.f32.gmra.mrb[70].mxu0 %v3717_v38 }
 0x10a   : > { %2403 = vmatprep.mubr.f32.mxu0 %v3736_v52 }
 0x10d   : > { %2404 = vmatmul.mubr.f32.gmra.mrb[72].mxu0 %v3748_v57 }
 0x10e   : > { %2406 = vmatprep.mubr.f32.mxu0 %v3764_v0 }
 0x111   : > { %2407 = vmatmul.mubr.f32.gmra.mrb[74].mxu0 %v3777_v9 }
 0x112   : > { %2409 = vmatprep.mubr.f32.mxu0 %v629_v42 }
 0x115   : > { %2410 = vmatmul.mubr.f32.gmra.mrb[76].mxu0 %v631_v46 }
 0x116   : > { %2412 = vmatprep.mubr.f32.mxu0 %v646_v40 }
 0x119   : > { %2413 = vmatmul.mubr.f32.gmra.mrb[78].mxu0 %v648_v12 }
 0x150   : > { %v2005_v19 = vpop.f32.mrb[0].mxu0 }
 0x151   : > { %v2085_v33 = vpop.f32.mrb[0].mxu1  ;;  %v2006_v38 = vpop.f32.mrb[1].mxu0 }
 0x152   : > { %v2007_v52 = vadd.f32 %v2006_v38, %v2005_v19  ;;  %v2086_v53 = vpop.f32.mrb[1].mxu1 }
 0x153   : > { %v2087_v54 = vadd.f32 %v2086_v53, %v2085_v33 }
 0x154   : > { %v2008_v55 = vpop.f32.mrb[2].mxu0 }
 0x155   : > { %v3906_v56 = vadd.f32 %v2087_v54, %v2007_v52  ;;  %v2088_v57 = vpop.f32.mrb[2].mxu1  ;;  %v2009_v58 = vpop.f32.mrb[3].mxu0  ;;  %v2907_v52 = vmov 0.0  }
 0x156   : > { %v2010_v59 = vadd.f32 %v2009_v58, %v2008_v55  ;;  %v2089_v60 = vpop.f32.mrb[3].mxu1  ;;  %2482 = vmatprep.mubr.msk.f32.mxu0 %vm2906_vm2, %v2907_v52  ;;  %2447 = vmatprep.mubr.msk.f32.mxu1 %vm2906_vm2, %v2907_v52 }
 0x157   : > { %v2090_v62 = vadd.f32 %v2089_v60, %v2088_v57 }
 0x158   : > { %v2011_v0 = vpop.f32.mrb[4].mxu0 }
 0x159   : > { %v3910_v3 = vadd.f32 %v2090_v62, %v2010_v59  ;;  %v2091_v4 = vpop.f32.mrb[4].mxu1  ;;  %v2012_v7 = vpop.f32.mrb[5].mxu0 }
 0x15a   : > { %v2013_v9 = vadd.f32 %v2012_v7, %v2011_v0  ;;  %v2092_v16 = vpop.f32.mrb[5].mxu1 }
 0x15b   : > { %v2093_v17 = vadd.f32 %v2092_v16, %v2091_v4 }
 0x15c   : > { %v2014_v18 = vpop.f32.mrb[6].mxu0 }
 0x15d   : > { %v3912_v22 = vadd.f32 %v2093_v17, %v2013_v9  ;;  %v2094_v23 = vpop.f32.mrb[6].mxu1  ;;  %v2015_v14 = vpop.f32.mrb[7].mxu0 }
 0x15e   : > { %v2016_v10 = vadd.f32 %v2015_v14, %v2014_v18  ;;  %v2095_v27 = vpop.f32.mrb[7].mxu1 }
 0x15f   : > { %v2096_v11 = vadd.f32 %v2095_v27, %v2094_v23 }
 0x160   : > { %v2017_v29 = vpop.f32.mrb[8].mxu0 }
 0x161   : > { %v3914_v47 = vadd.f32 %v2096_v11, %v2016_v10  ;;  %v2097_v13 = vpop.f32.mrb[8].mxu1  ;;  %v2018_v48 = vpop.f32.mrb[9].mxu0 }
 0x162   : > { %v2019_v8 = vadd.f32 %v2018_v48, %v2017_v29  ;;  %v2098_v49 = vpop.f32.mrb[9].mxu1 }
 0x163   : > { %v2099_v2 = vadd.f32 %v2098_v49, %v2097_v13 }
 0x164   : > { %v2020_v32 = vpop.f32.mrb[10].mxu0 }
 0x165   : > { %v3916_v51 = vadd.f32 %v2099_v2, %v2019_v8  ;;  %v2100_v25 = vpop.f32.mrb[10].mxu1  ;;  %v2021_v35 = vpop.f32.mrb[11].mxu0 }
 0x166   : > { %v2022_v26 = vadd.f32 %v2021_v35, %v2020_v32  ;;  %v2101_v28 = vpop.f32.mrb[11].mxu1 }
 0x167   : > { %v2102_v44 = vadd.f32 %v2101_v28, %v2100_v25 }
 0x168   : > { %v2023_v63 = vpop.f32.mrb[12].mxu0 }
 0x169   : > { %v3918_v5 = vadd.f32 %v2102_v44, %v2022_v26  ;;  %v2103_v6 = vpop.f32.mrb[12].mxu1  ;;  %v2024_v15 = vpop.f32.mrb[13].mxu0 }
 0x16a   : > { %v2025_v21 = vadd.f32 %v2024_v15, %v2023_v63  ;;  %v2104_v30 = vpop.f32.mrb[13].mxu1 }
 0x16b   : > { %v2105_v31 = vadd.f32 %v2104_v30, %v2103_v6 }
 0x16c   : > { %v2026_v34 = vpop.f32.mrb[14].mxu0 }
 0x16d   : > { %v3920_v36 = vadd.f32 %v2105_v31, %v2025_v21  ;;  %v2106_v37 = vpop.f32.mrb[14].mxu1  ;;  %v2027_v39 = vpop.f32.mrb[15].mxu0 }
 0x16e   : > { %v2028_v42 = vadd.f32 %v2027_v39, %v2026_v34  ;;  %v2107_v43 = vpop.f32.mrb[15].mxu1 }
 0x16f   : > { %v2108_v20 = vadd.f32 %v2107_v43, %v2106_v37 }
 0x170   : > { %v2029_v45 = vpop.f32.mrb[16].mxu0 }
 0x171   : > { %v3922_v46 = vadd.f32 %v2108_v20, %v2028_v42  ;;  %v2109_v50 = vpop.f32.mrb[16].mxu1  ;;  %v2030_v1 = vpop.f32.mrb[17].mxu0 }
 0x172   : > { %v2031_v24 = vadd.f32 %v2030_v1, %v2029_v45  ;;  %v2110_v41 = vpop.f32.mrb[17].mxu1 }
 0x173   : > { %v2111_v40 = vadd.f32 %v2110_v41, %v2109_v50 }
 0x174   : > { %v2032_v12 = vpop.f32.mrb[18].mxu0 }
 0x175   : > { %v3924_v19 = vadd.f32 %v2111_v40, %v2031_v24  ;;  %v2112_v33 = vpop.f32.mrb[18].mxu1  ;;  %v2033_v38 = vpop.f32.mrb[19].mxu0 }
 0x176   : > { %v2034_v53 = vadd.f32 %v2033_v38, %v2032_v12  ;;  %v2113_v54 = vpop.f32.mrb[19].mxu1 }
 0x177   : > { %v2114_v55 = vadd.f32 %v2113_v54, %v2112_v33 }
 0x178   : > { %v2035_v57 = vpop.f32.mrb[20].mxu0 }
 0x179   : > { %v3926_v58 = vadd.f32 %v2114_v55, %v2034_v53  ;;  %v2115_v59 = vpop.f32.mrb[20].mxu1  ;;  %v2036_v60 = vpop.f32.mrb[21].mxu0 }
 0x17a   : > { %v2037_v62 = vadd.f32 %v2036_v60, %v2035_v57  ;;  %v2116_v0 = vpop.f32.mrb[21].mxu1 }
 0x17b   : > { %v2117_v4 = vadd.f32 %v2116_v0, %v2115_v59 }
 0x17c   : > { %v2038_v7 = vpop.f32.mrb[22].mxu0 }
 0x17d   : > { %v3928_v9 = vadd.f32 %v2117_v4, %v2037_v62  ;;  %v2118_v16 = vpop.f32.mrb[22].mxu1  ;;  %v2039_v17 = vpop.f32.mrb[23].mxu0 }
 0x17e   : > { %v2040_v18 = vadd.f32 %v2039_v17, %v2038_v7  ;;  %v2119_v23 = vpop.f32.mrb[23].mxu1 }
 0x17f   : > { %v2120_v14 = vadd.f32 %v2119_v23, %v2118_v16 }
 0x180   : > { %v2041_v10 = vpop.f32.mrb[24].mxu0 }
 0x181   : > { %v3930_v27 = vadd.f32 %v2120_v14, %v2040_v18  ;;  %v2121_v11 = vpop.f32.mrb[24].mxu1  ;;  %v2042_v29 = vpop.f32.mrb[25].mxu0 }
 0x182   : > { %v2043_v13 = vadd.f32 %v2042_v29, %v2041_v10  ;;  %v2122_v48 = vpop.f32.mrb[25].mxu1 }
 0x183   : > { %v2123_v8 = vadd.f32 %v2122_v48, %v2121_v11 }
 0x184   : > { %v2044_v49 = vpop.f32.mrb[26].mxu0 }
 0x185   : > { %v3932_v2 = vadd.f32 %v2123_v8, %v2043_v13  ;;  %v2124_v32 = vpop.f32.mrb[26].mxu1  ;;  %v2045_v25 = vpop.f32.mrb[27].mxu0 }
 0x186   : > { %v2046_v35 = vadd.f32 %v2045_v25, %v2044_v49  ;;  %v2125_v26 = vpop.f32.mrb[27].mxu1 }
 0x187   : > { %v2126_v28 = vadd.f32 %v2125_v26, %v2124_v32 }
 0x188   : > { %v2047_v44 = vpop.f32.mrb[28].mxu0 }
 0x189   : > { %v3934_v63 = vadd.f32 %v2126_v28, %v2046_v35  ;;  %v2127_v6 = vpop.f32.mrb[28].mxu1  ;;  %v2048_v15 = vpop.f32.mrb[29].mxu0 }
 0x18a   : > { %v2049_v21 = vadd.f32 %v2048_v15, %v2047_v44  ;;  %v2128_v30 = vpop.f32.mrb[29].mxu1 }
 0x18b   : > { %v2129_v31 = vadd.f32 %v2128_v30, %v2127_v6 }
 0x18c   : > { %v2050_v34 = vpop.f32.mrb[30].mxu0 }
 0x18d   : > { %v3936_v37 = vadd.f32 %v2129_v31, %v2049_v21  ;;  %v2130_v39 = vpop.f32.mrb[30].mxu1  ;;  %v2051_v42 = vpop.f32.mrb[31].mxu0 }
 0x18e   : > { %v2052_v43 = vadd.f32 %v2051_v42, %v2050_v34  ;;  %v2131_v20 = vpop.f32.mrb[31].mxu1 }
 0x18f   : > { %v2132_v45 = vadd.f32 %v2131_v20, %v2130_v39 }
 0x190   : > { %v2165_v50 = vpop.f32.mrb[32].mxu0 }
 0x191   : > { %v3938_v1 = vadd.f32 %v2132_v45, %v2052_v43  ;;  %v2166_v24 = vpop.f32.mrb[33].mxu0  ;;  %v2245_v41 = vpop.f32.mrb[32].mxu1 }
 0x192   : > { %v2167_v40 = vadd.f32 %v2166_v24, %v2165_v50  ;;  %v2246_v12 = vpop.f32.mrb[33].mxu1 }
 0x193   : > { %v2247_v33 = vadd.f32 %v2246_v12, %v2245_v41 }
 0x194   : > { %v1152_v38 = vadd.f32 %v2167_v40, %v3906_v56  ;;  %v2168_v52 = vpop.f32.mrb[34].mxu0 }
 0x195   : > { %v2169_v53 = vpop.f32.mrb[35].mxu0  ;;  %v2248_v54 = vpop.f32.mrb[34].mxu1 }
 0x196   : > { %v2170_v55 = vadd.f32 %v2169_v53, %v2168_v52  ;;  %v2249_v57 = vpop.f32.mrb[35].mxu1  ;;  %v3941_v59 = vadd.f32 %v2247_v33, %v1152_v38 }
 0x197   : > { %v2250_v60 = vadd.f32 %v2249_v57, %v2248_v54 }
 0x198   : > { %v1157_v62 = vadd.f32 %v2170_v55, %v3910_v3  ;;  %v2171_v0 = vpop.f32.mrb[36].mxu0 }
 0x199   : > { %v2172_v4 = vpop.f32.mrb[37].mxu0  ;;  %v2251_v7 = vpop.f32.mrb[36].mxu1 }
 0x19a   : > { %v2173_v16 = vadd.f32 %v2172_v4, %v2171_v0  ;;  %v2252_v17 = vpop.f32.mrb[37].mxu1  ;;  %v3944_v18 = vadd.f32 %v2250_v60, %v1157_v62 }
 0x19b   : > { %v2253_v23 = vadd.f32 %v2252_v17, %v2251_v7 }
 0x19c   : > { %v1162_v56 = vadd.f32 %v2173_v16, %v3912_v22  ;;  %v2174_v14 = vpop.f32.mrb[38].mxu0 }
 0x19d   : > { %v2175_v10 = vpop.f32.mrb[39].mxu0  ;;  %v2254_v11 = vpop.f32.mrb[38].mxu1 }
 0x19e   : > { %v2176_v29 = vadd.f32 %v2175_v10, %v2174_v14  ;;  %v2255_v13 = vpop.f32.mrb[39].mxu1  ;;  %v3947_v48 = vadd.f32 %v2253_v23, %v1162_v56 }
 0x19f   : > { %v2256_v8 = vadd.f32 %v2255_v13, %v2254_v11 }
 0x1a0   : > { %v1167_v3 = vadd.f32 %v2176_v29, %v3914_v47  ;;  %v2177_v49 = vpop.f32.mrb[40].mxu0 }
 0x1a1   : > { %v2178_v32 = vpop.f32.mrb[41].mxu0  ;;  %v2257_v25 = vpop.f32.mrb[40].mxu1 }
 0x1a2   : > { %v2179_v35 = vadd.f32 %v2178_v32, %v2177_v49  ;;  %v2258_v26 = vpop.f32.mrb[41].mxu1  ;;  %v3950_v28 = vadd.f32 %v2256_v8, %v1167_v3 }
 0x1a3   : > { %v2259_v44 = vadd.f32 %v2258_v26, %v2257_v25 }
 0x1a4   : > { %v1172_v22 = vadd.f32 %v2179_v35, %v3916_v51  ;;  %v2180_v6 = vpop.f32.mrb[42].mxu0 }
 0x1a5   : > { %v2181_v15 = vpop.f32.mrb[43].mxu0  ;;  %v2260_v21 = vpop.f32.mrb[42].mxu1 }
 0x1a6   : > { %v2182_v30 = vadd.f32 %v2181_v15, %v2180_v6  ;;  %v2261_v31 = vpop.f32.mrb[43].mxu1  ;;  %v3953_v34 = vadd.f32 %v2259_v44, %v1172_v22 }
 0x1a7   : > { %v2262_v39 = vadd.f32 %v2261_v31, %v2260_v21 }
 0x1a8   : > { %v1177_v47 = vadd.f32 %v2182_v30, %v3918_v5  ;;  %v2183_v42 = vpop.f32.mrb[44].mxu0 }
 0x1a9   : > { %v2184_v43 = vpop.f32.mrb[45].mxu0  ;;  %v2263_v20 = vpop.f32.mrb[44].mxu1 }
 0x1aa   : > { %v2185_v45 = vadd.f32 %v2184_v43, %v2183_v42  ;;  %v2264_v50 = vpop.f32.mrb[45].mxu1  ;;  %v3956_v24 = vadd.f32 %v2262_v39, %v1177_v47 }
 0x1ab   : > { %v2265_v41 = vadd.f32 %v2264_v50, %v2263_v20 }
 0x1ac   : > { %v1182_v51 = vadd.f32 %v2185_v45, %v3920_v36  ;;  %v2186_v40 = vpop.f32.mrb[46].mxu0 }
 0x1ad   : > { %v2187_v12 = vpop.f32.mrb[47].mxu0  ;;  %v2266_v33 = vpop.f32.mrb[46].mxu1 }
 0x1ae   : > { %v2188_v38 = vadd.f32 %v2187_v12, %v2186_v40  ;;  %v2267_v52 = vpop.f32.mrb[47].mxu1  ;;  %v3959_v53 = vadd.f32 %v2265_v41, %v1182_v51 }
 0x1af   : > { %v2268_v54 = vadd.f32 %v2267_v52, %v2266_v33 }
 0x1b0   : > { %v1187_v5 = vadd.f32 %v2188_v38, %v3922_v46  ;;  %v2189_v55 = vpop.f32.mrb[48].mxu0 }
 0x1b1   : > { %v2190_v57 = vpop.f32.mrb[49].mxu0  ;;  %v2269_v60 = vpop.f32.mrb[48].mxu1 }
 0x1b2   : > { %v2191_v62 = vadd.f32 %v2190_v57, %v2189_v55  ;;  %v2270_v0 = vpop.f32.mrb[49].mxu1  ;;  %v3962_v4 = vadd.f32 %v2268_v54, %v1187_v5 }
 0x1b3   : > { %v2271_v7 = vadd.f32 %v2270_v0, %v2269_v60 }
 0x1b4   : > { %v1192_v36 = vadd.f32 %v2191_v62, %v3924_v19  ;;  %v2192_v16 = vpop.f32.mrb[50].mxu0 }
 0x1b5   : > { %v2193_v17 = vpop.f32.mrb[51].mxu0  ;;  %v2272_v23 = vpop.f32.mrb[50].mxu1 }
 0x1b6   : > { %v2194_v56 = vadd.f32 %v2193_v17, %v2192_v16  ;;  %v2273_v14 = vpop.f32.mrb[51].mxu1  ;;  %v3965_v10 = vadd.f32 %v2271_v7, %v1192_v36 }
 0x1b7   : > { %v2274_v11 = vadd.f32 %v2273_v14, %v2272_v23 }
 0x1b8   : > { %v1197_v46 = vadd.f32 %v2194_v56, %v3926_v58  ;;  %v2195_v29 = vpop.f32.mrb[52].mxu0 }
 0x1b9   : > { %v2196_v13 = vpop.f32.mrb[53].mxu0  ;;  %v2275_v8 = vpop.f32.mrb[52].mxu1 }
 0x1ba   : > { %v2197_v3 = vadd.f32 %v2196_v13, %v2195_v29  ;;  %v2276_v49 = vpop.f32.mrb[53].mxu1  ;;  %v3968_v32 = vadd.f32 %v2274_v11, %v1197_v46 }
 0x1bb   : > { %v2277_v25 = vadd.f32 %v2276_v49, %v2275_v8 }
 0x1bc   : > { %v1202_v19 = vadd.f32 %v2197_v3, %v3928_v9  ;;  %v2198_v35 = vpop.f32.mrb[54].mxu0 }
 0x1bd   : > { %v2199_v26 = vpop.f32.mrb[55].mxu0  ;;  %v2278_v44 = vpop.f32.mrb[54].mxu1 }
 0x1be   : > { %v2200_v22 = vadd.f32 %v2199_v26, %v2198_v35  ;;  %v2279_v6 = vpop.f32.mrb[55].mxu1  ;;  %v3971_v15 = vadd.f32 %v2277_v25, %v1202_v19 }
 0x1bf   : > { %v2280_v21 = vadd.f32 %v2279_v6, %v2278_v44 }
 0x1c0   : > { %v1207_v58 = vadd.f32 %v2200_v22, %v3930_v27  ;;  %v2201_v30 = vpop.f32.mrb[56].mxu0 }
 0x1c1   : > { %v2202_v31 = vpop.f32.mrb[57].mxu0  ;;  %v2281_v39 = vpop.f32.mrb[56].mxu1 }
 0x1c2   : > { %v2203_v47 = vadd.f32 %v2202_v31, %v2201_v30  ;;  %v2282_v42 = vpop.f32.mrb[57].mxu1  ;;  %v3974_v43 = vadd.f32 %v2280_v21, %v1207_v58 }
 0x1c3   : > { %v2283_v20 = vadd.f32 %v2282_v42, %v2281_v39 }
 0x1c4   : > { %v1212_v9 = vadd.f32 %v2203_v47, %v3932_v2  ;;  %v2204_v45 = vpop.f32.mrb[58].mxu0 }
 0x1c5   : > { %v2205_v50 = vpop.f32.mrb[59].mxu0  ;;  %v2284_v41 = vpop.f32.mrb[58].mxu1 }
 0x1c6   : > { %v2206_v51 = vadd.f32 %v2205_v50, %v2204_v45  ;;  %v2285_v40 = vpop.f32.mrb[59].mxu1  ;;  %v3977_v12 = vadd.f32 %v2283_v20, %v1212_v9 }
 0x1c7   : > { %v2286_v33 = vadd.f32 %v2285_v40, %v2284_v41 }
 0x1c8   : > { %v1217_v27 = vadd.f32 %v2206_v51, %v3934_v63  ;;  %v2207_v38 = vpop.f32.mrb[60].mxu0 }
 0x1c9   : > { %v2208_v52 = vpop.f32.mrb[61].mxu0  ;;  %v2287_v54 = vpop.f32.mrb[60].mxu1 }
 0x1ca   : > { %v2209_v5 = vadd.f32 %v2208_v52, %v2207_v38  ;;  %v2288_v55 = vpop.f32.mrb[61].mxu1  ;;  %v3980_v57 = vadd.f32 %v2286_v33, %v1217_v27 }
 0x1cb   : > { %v2289_v60 = vadd.f32 %v2288_v55, %v2287_v54 }
 0x1cc   : > { %v1222_v2 = vadd.f32 %v2209_v5, %v3936_v37  ;;  %v2210_v62 = vpop.f32.mrb[62].mxu0 }
 0x1cd   : > { %v2211_v0 = vpop.f32.mrb[63].mxu0  ;;  %v2290_v7 = vpop.f32.mrb[62].mxu1 }
 0x1ce   : > { %v2212_v36 = vadd.f32 %v2211_v0, %v2210_v62  ;;  %v2291_v16 = vpop.f32.mrb[63].mxu1  ;;  %v3983_v17 = vadd.f32 %v2289_v60, %v1222_v2 }
 0x1cf   : > { %v2292_v63 = vadd.f32 %v2291_v16, %v2290_v7 }
 0x1d0   : > { %v1227_v23 = vadd.f32 %v2212_v36, %v3938_v1  ;;  %v2393_v56 = vpop.f32.mrb[64].mxu0 }
 0x1d1   : > { %v1447_v14 = vadd.f32 %v2393_v56, %v3944_v18  ;;  %v1441_v11 = vpop.f32.mrb[65].mxu0 }
 0x1d2   : > { %v1442_v46 = vadd.f32 %v1441_v11, %v3941_v59  ;;  %v3988_v37 = vadd.f32 %v2292_v63, %v1227_v23 }
 0x1d3   : > { %1521 = vst [vmem:[%s3014_s20 + $0x8] sm:$0xff] %v1447_v14  ;;  %v1607_v29 = vmul.f32 %v1447_v14, %v1447_v14 }
 0x1d4   : > { %1520 = vst [vmem:[%s3014_s20] sm:$0xff] %v1442_v46  ;;  %v2646_v13 = vpack.c.bf16 %v1447_v14, %v1442_v46  ;;  %v1606_v8 = vmul.f32 %v1442_v46, %v1442_v46  ;;  %v2396_v3 = vpop.f32.mrb[66].mxu0 }
 0x1d5   : > { %v1457_v49 = vadd.f32 %v2396_v3, %v3950_v28  ;;  %v1451_v25 = vpop.f32.mrb[67].mxu0 }
 0x1d6   : > { %v2670_v1 = vpack.c.bf16 %v1607_v29, %v1606_v8  ;;  %v1452_v19 = vadd.f32 %v1451_v25, %v3947_v48  ;;  %2647 = vmatpush3.bf16.msra.mxu1 %v2646_v13 }
 0x1d7   : > { %1523 = vst [vmem:[%s3014_s20 + $0x18] sm:$0xff] %v1457_v49  ;;  %v1609_v18 = vmul.f32 %v1457_v49, %v1457_v49  ;;  %2648 = vmatprep.subr.bf16.mxu1 %v2905_v61 }
 0x1d8   : > { %1522 = vst [vmem:[%s3014_s20 + $0x10] sm:$0xff] %v1452_v19  ;;  %v2649_v59 = vpack.c.bf16 %v1457_v49, %v1452_v19  ;;  %v1608_v35 = vmul.f32 %v1452_v19, %v1452_v19  ;;  %v2399_v26 = vpop.f32.mrb[68].mxu0  ;;  %2671 = vmatpush3.bf16.msra.mxu0 %v2670_v1 }
 0x1d9   : > { %v1467_v44 = vadd.f32 %v2399_v26, %v3956_v24  ;;  %v1461_v22 = vpop.f32.mrb[69].mxu0  ;;  %2672 = vmatprep.subr.bf16.mxu0 %v2905_v61 }
 0x1da   : > { %v2673_v28 = vpack.c.bf16 %v1609_v18, %v1608_v35  ;;  %v1462_v48 = vadd.f32 %v1461_v22, %v3953_v34  ;;  %2650 = vmatpush3.bf16.msra.mxu1 %v2649_v59 }
 0x1db   : > { %1525 = vst [vmem:[%s3014_s20 + $0x28] sm:$0xff] %v1467_v44  ;;  %v1611_v6 = vmul.f32 %v1467_v44, %v1467_v44  ;;  %2651 = vmatprep.subr.bf16.mxu1 %v2905_v61 }
 0x1dc   : > { %1524 = vst [vmem:[%s3014_s20 + $0x20] sm:$0xff] %v1462_v48  ;;  %v2652_v21 = vpack.c.bf16 %v1467_v44, %v1462_v48  ;;  %v1610_v58 = vmul.f32 %v1462_v48, %v1462_v48  ;;  %v2402_v30 = vpop.f32.mrb[70].mxu0  ;;  %2674 = vmatpush3.bf16.msra.mxu0 %v2673_v28 }
 0x1dd   : > { %v1477_v24 = vadd.f32 %v2402_v30, %v3962_v4  ;;  %v1471_v31 = vpop.f32.mrb[71].mxu0  ;;  %2675 = vmatprep.subr.bf16.mxu0 %v2905_v61 }
 0x1de   : > { %v2676_v39 = vpack.c.bf16 %v1611_v6, %v1610_v58  ;;  %v1472_v34 = vadd.f32 %v1471_v31, %v3959_v53  ;;  %2653 = vmatpush3.bf16.msra.mxu1 %v2652_v21 }
 0x1df   : > { %1527 = vst [vmem:[%s3014_s20 + $0x38] sm:$0xff] %v1477_v24  ;;  %v1613_v47 = vmul.f32 %v1477_v24, %v1477_v24  ;;  %2654 = vmatprep.subr.bf16.mxu1 %v2905_v61 }
 0x1e0   : > { %1526 = vst [vmem:[%s3014_s20 + $0x30] sm:$0xff] %v1472_v34  ;;  %v2655_v42 = vpack.c.bf16 %v1477_v24, %v1472_v34  ;;  %v1612_v20 = vmul.f32 %v1472_v34, %v1472_v34  ;;  %v2405_v9 = vpop.f32.mrb[72].mxu0  ;;  %2677 = vmatpush3.bf16.msra.mxu0 %v2676_v39 }
 0x1e1   : > { %v1487_v4 = vadd.f32 %v2405_v9, %v3968_v32  ;;  %v1481_v45 = vpop.f32.mrb[73].mxu0  ;;  %2678 = vmatprep.subr.bf16.mxu0 %v2905_v61 }
 0x1e2   : > { %v2679_v50 = vpack.c.bf16 %v1613_v47, %v1612_v20  ;;  %v1482_v53 = vadd.f32 %v1481_v45, %v3965_v10  ;;  %2656 = vmatpush3.bf16.msra.mxu1 %v2655_v42 }
 0x1e3   : > { %1529 = vst [vmem:[%s3014_s20 + $0x48] sm:$0xff] %v1487_v4  ;;  %v1615_v41 = vmul.f32 %v1487_v4, %v1487_v4  ;;  %2657 = vmatprep.subr.bf16.mxu1 %v2905_v61 }
 0x1e4   : > { %1528 = vst [vmem:[%s3014_s20 + $0x40] sm:$0xff] %v1482_v53  ;;  %v2658_v51 = vpack.c.bf16 %v1487_v4, %v1482_v53  ;;  %v1614_v40 = vmul.f32 %v1482_v53, %v1482_v53  ;;  %v2408_v33 = vpop.f32.mrb[74].mxu0  ;;  %2680 = vmatpush3.bf16.msra.mxu0 %v2679_v50 }
 0x1e5   : > { %v1497_v32 = vadd.f32 %v2408_v33, %v3974_v43  ;;  %v1491_v27 = vpop.f32.mrb[75].mxu0  ;;  %2681 = vmatprep.subr.bf16.mxu0 %v2905_v61 }
 0x1e6   : > { %v2682_v38 = vpack.c.bf16 %v1615_v41, %v1614_v40  ;;  %v1492_v10 = vadd.f32 %v1491_v27, %v3971_v15  ;;  %2659 = vmatpush3.bf16.msra.mxu1 %v2658_v51 }
 0x1e7   : > { %1531 = vst [vmem:[%s3014_s20 + $0x58] sm:$0xff] %v1497_v32  ;;  %v1617_v52 = vmul.f32 %v1497_v32, %v1497_v32  ;;  %2660 = vmatprep.subr.bf16.mxu1 %v2905_v61 }
 0x1e8   : > { %1530 = vst [vmem:[%s3014_s20 + $0x50] sm:$0xff] %v1492_v10  ;;  %v2661_v54 = vpack.c.bf16 %v1497_v32, %v1492_v10  ;;  %v1616_v5 = vmul.f32 %v1492_v10, %v1492_v10  ;;  %v2411_v55 = vpop.f32.mrb[76].mxu0  ;;  %2683 = vmatpush3.bf16.msra.mxu0 %v2682_v38 }
 0x1e9   : > { %v1507_v43 = vadd.f32 %v2411_v55, %v3980_v57  ;;  %v1501_v60 = vpop.f32.mrb[77].mxu0  ;;  %2684 = vmatprep.subr.bf16.mxu0 %v2905_v61 }
 0x1ea   : > { %v2685_v2 = vpack.c.bf16 %v1617_v52, %v1616_v5  ;;  %v1502_v15 = vadd.f32 %v1501_v60, %v3977_v12  ;;  %2662 = vmatpush3.bf16.msra.mxu1 %v2661_v54 }
 0x1eb   : > { %1533 = vst [vmem:[%s3014_s20 + $0x68] sm:$0xff] %v1507_v43  ;;  %v1619_v62 = vmul.f32 %v1507_v43, %v1507_v43  ;;  %2663 = vmatprep.subr.bf16.mxu1 %v2905_v61 }
 0x1ec   : > { %1532 = vst [vmem:[%s3014_s20 + $0x60] sm:$0xff] %v1502_v15  ;;  %v2664_v0 = vpack.c.bf16 %v1507_v43, %v1502_v15  ;;  %v1618_v7 = vmul.f32 %v1502_v15, %v1502_v15  ;;  %v2414_v36 = vpop.f32.mrb[78].mxu0  ;;  %2686 = vmatpush3.bf16.msra.mxu0 %v2685_v2 }
 0x1ed   : > { %v1517_v57 = vadd.f32 %v2414_v36, %v3988_v37  ;;  %v1511_v16 = vpop.f32.mrb[79].mxu0  ;;  %2687 = vmatprep.subr.bf16.mxu0 %v2905_v61 }
 0x1ee   : > { %v2688_v63 = vpack.c.bf16 %v1619_v62, %v1618_v7  ;;  %v1512_v12 = vadd.f32 %v1511_v16, %v3983_v17  ;;  %2665 = vmatpush3.bf16.msra.mxu1 %v2664_v0  ;;  %v2908_v17 = vmov 1.0  }
 0x1ef   : > { %1535 = vst [vmem:[%s3014_s20 + $0x78] sm:$0xff] %v1517_v57  ;;  %v1621_v23 = vmul.f32 %v1517_v57, %v1517_v57  ;;  %2666 = vmatprep.subr.bf16.mxu1 %v2905_v61 }
 0x1f0   : > { %1534 = vst [vmem:[%s3014_s20 + $0x70] sm:$0xff] %v1512_v12  ;;  %v2667_v56 = vpack.c.bf16 %v1517_v57, %v1512_v12  ;;  %v1620_v14 = vmul.f32 %v1512_v12, %v1512_v12  ;;  %2689 = vmatpush3.bf16.msra.mxu0 %v2688_v63 }
 0x1f1   : > { %2690 = vmatprep.subr.bf16.mxu0 %v2905_v61 }
 0x1f2   : > { %v2691_v11 = vpack.c.bf16 %v1621_v23, %v1620_v14  ;;  %2668 = vmatpush3.bf16.msra.mxu1 %v2667_v56 }
 0x1f4   : > { %2692 = vmatpush3.bf16.msra.mxu0 %v2691_v11 }
 0x1f5   : > { %2448 = vmatmul.mubr.f32.vlgmr.msra.gmra.mrb[64].mxu1 %v2908_v17 }
 0x1f7   : > { %2483 = vmatmul.mubr.f32.vlgmr.msra.gmra.mrb[80].mxu0 %v2908_v17 }
 0x1f8   : > { %2788 = shalt.err (!%p2785_p10)
}
 0x1f9   : > { %s2789_s20 = scalar_lea.hbm %s4039_s9, 2048  ;;  %s2793_s6 = scalar_lea.hbm %s4131_s2, 8192 }
 0x1fa   : > { %p2790_p11 = scmp.ne.s32.totalorder %s4039_s9, %s2789_s20  ;;  %p2794_p0 = scmp.lt.u32.totalorder %s4039_s9, %s4131_s2 }
 0x1fb   : > { %p2795_p1 = scmp.lt.u32.totalorder %s2793_s6, %s2789_s20  ;;  %p2797_p4 = scmp.lt.u32.totalorder %s2789_s20, %s4039_s9 }
 0x1fc   : > { %p2791_p12 = pnand %p2790_p11, %p2984_p3 }
 0x1fd   : > { %p2796_p2 = por %p2795_p1, %p2794_p0 }
 0x1fe   : > { %p2792_p13 = pneg %p2791_p12 }
 0x1ff   : > { %p2798_p5 = por %p2797_p4, %p2796_p2 }
 0x201   : > { %p2799_p6 = pnand %p2798_p5, %p2792_p13 }
 0x203   : > { %2802 = shalt.err (!%p2799_p6)
}
 0x204   : > { %s2910_s7 = smov 128   ;;  %s2911_s24 = smov 8   ;;  %vm1695_vm3 = vcmask 1040384  }
 0x205   : > { %2693 = dma.vmem_to_hbm [thread:$0]  (%p2984_p3), %s4042_s23, 2048, %s4039_s9, %s1699_s10, %s2910_s7, %s2910_s7, %s2911_s24  }
 0x206   : > { %s1966_s27 = sshll.u32 %s2891_s16, 1  ;;  %s1738_s20 = sshll.u32 %s3016_s21, 4  ;;  %s4076_s20 = int_to_ptr.vmem [resolvable:$true] %s1738_s20 }
 0x207   : > { %s1734_s28 = sadd.s32 %s2887_s15, %s1966_s27  ;;  %s1704_s15 = scalar_lea.sflag [#allocation7], %s3005_s4 }
 0x208   : > { %s1967_s29 = sshll.u32 %s1734_s28, 5  ;;  %s2803_s16 = scalar_lea.vmem %s4076_s20, 32 }
 0x209   : > { %s4074_s6 = scalar_lea.hbm %s4132_s3, %s1967_s29  ;;  %p2804_p7 = scmp.ne.s32.totalorder %s4076_s20, %s2803_s16 }
 0x20a   : > { %s2912_s9 = smov [#allocation6]  }
 0x20b   : > { %p2805_p9 = pnand %p2804_p7, %p2984_p3  ;;  %s2807_s23 = sshll.u32 %s2912_s9, 4  ;;  %s2808_s23 = int_to_ptr.vmem [resolvable:$false] %s2807_s23 }
 0x20c   : > { %s2809_s10 = scalar_lea.vmem %s2808_s23, 64  ;;  %p2810_p11 = scmp.lt.s32.totalorder %s4076_s20, %s2808_s23 }
 0x20d   : > { %p2806_p10 = pneg %p2805_p9  ;;  %p2811_p12 = scmp.lt.s32.totalorder %s2809_s10, %s2803_s16 }
 0x20f   : > { %p2812_p13 = por %p2811_p12, %p2810_p11 }
 0x211   : > { %p2813_p0 = pnand %p2812_p13, %p2806_p10 }
 0x2c8   : > { %v1602_v61 = vpop.f32.mrb[64].mxu1 }
 0x2c9   : > { %v2449_v46 = vpop.f32.mrb[65].mxu1 }
 0x2ca   : > { %v1688_v37 = vpop.f32.mrb[80].mxu0 }
 0x2cb   : > { %v1693_v29 = vrot.slane %v1688_v37, 7  ;;  %v2484_v13 = vpop.f32.mrb[81].mxu0 }
 0x2cd   : > { %v1696_v8 = vsel %vm1695_vm3, %v1602_v61, %v1693_v29 }
 0x2ce   : > { %1697 = vst [vmem:[%s3016_s21] sm:$0x3] %v1696_v8 }
 0x2cf   : > { %2816 = shalt.err (!%p2813_p0)
}
 0x2d0   : > { %s2817_s4 = scalar_lea.hbm %s4074_s6, 32  ;;  %s2821_s11 = scalar_lea.hbm %s4132_s3, 128 }
 0x2d1   : > { %p2818_p1 = scmp.ne.s32.totalorder %s4074_s6, %s2817_s4  ;;  %p2822_p5 = scmp.lt.u32.totalorder %s4074_s6, %s4132_s3 }
 0x2d2   : > { %p2823_p6 = scmp.lt.u32.totalorder %s2821_s11, %s2817_s4  ;;  %p2825_p9 = scmp.lt.u32.totalorder %s2817_s4, %s4074_s6 }
 0x2d3   : > { %p2819_p2 = pnand %p2818_p1, %p2984_p3 }
 0x2d4   : > { %p2824_p7 = por %p2823_p6, %p2822_p5 }
 0x2d5   : > { %p2820_p4 = pneg %p2819_p2 }
 0x2d6   : > { %p2826_p10 = por %p2825_p9, %p2824_p7 }
 0x2d8   : > { %p2827_p11 = pnand %p2826_p10, %p2820_p4 }
 0x2da   : > { %2830 = shalt.err (!%p2827_p11)
}
 0x2db   : > { %2694 = dma.vmem_to_hbm [thread:$0]  (%p2984_p3), %s4076_s20, 32, %s4074_s6, %s1704_s15  }
 0x2dc PF: > { %p2704_p12 = scmp.ge.s32.totalorder %s2903_s19, 2  ;;  %s1750_s27 = sand.u32 1, %s2875_s12  }
 0x2dd   : > { %s1751_s28 = scalar_lea.sflag [#allocation5], %s1750_s27 }
 0x2de   : > { %p2698_p13 = pnand %p2704_p12, %p2993_p8 }
 0x2e0   : > { %2866 = dma.done.wait (!%p2698_p13), %s1751_s28, 2048  }
 0x2e1   : > { %2868 = vsyncadd (!%p2698_p13), %s1751_s28, 4294965248  ;;  %s1760_s29 = scalar_lea.sflag [#allocation7], %s1750_s27 }
 0x2e2   : > { %2870 = dma.done.wait (!%p2698_p13), %s1760_s29, 32  }
 0x2e3   : > { %2872 = vsyncadd (!%p2698_p13), %s1760_s29, 4294967264  ;;  %s20_s19 = sadd.s32 1, %s2903_s19   ;;  %s4140_s25 = sld [smem:[#allocation13_spill]] }
 0x2e4   : > { %p17_p0 = scmp.ge.s32.totalorder %s20_s19, 6   ;;  %s4141_s12 = smov %s2879_s13 }
 0x2e5   : > { %s4142_s13 = smov %s2883_s14  ;;  %s4143_s14 = smov %s3002_s30 }
 0x2e6   : > { %s4144_s15 = smov %s2895_s17  ;;  %s4145_s16 = smov %s2899_s18 }
 0x2e7   : > { %s4146_s17 = smov %s4149_s22  ;;  %19 = sbr.rel (!%p17_p0) target bundleno = 9 (0x9), region = 190 }
 0x2e9   : > { %s4147_s18 = smov %s4140_s25 }
 0x2ee   :  { %1765 = vsyncpa [#allocation5], 1 }
 0x2ef   :  { %1767 = vsyncpa [#allocation5 + $0x1], 1 }
 0x2f0   :  { %1768 = vsyncpa [#allocation7], 1 }
 0x2f1   :  { %1770 = vsyncpa [#allocation7 + $0x1], 1 }
 0x2f2   :  { %1771 = vsyncmov [#allocation3] }
 0x2f5   :  { %s1772_s26 = vpop.sfrf %1771 }
 0x2f6   :  { %p1970_p3 = scmp.ne.s32.totalorder %s1772_s26, 0 }
 0x2f8   :  { %1776 = shalt.err (%p1970_p3)  }
 0x2f9   :  { %1778 = vsyncmov [#allocation3 + $0x1] }
 0x2fc   :  { %s1779_s30 = vpop.sfrf %1778 }
 0x2fd   :  { %p1971_p8 = scmp.ne.s32.totalorder %s1779_s30, 0 }
 0x2ff   :  { %1783 = shalt.err (%p1971_p8)  }

</bundles_post_ra>
